<compile_context>
chip_gen: v7x
topology: tpu7x:2x2x1
jax: 0.10.0
libtpu: 0.0.40
codegen_flags: <defaults>
</compile_context>

<pallas_src>
import math
import jax
import jax.numpy as jnp
from jax import lax
from jax.experimental import pallas as pl
from jax.experimental.pallas import tpu as pltpu

# ---------------- model / shape config (small, deterministic) ----------------
B = 2          # batch
S = 8          # src_len
D = 32         # d_model
H = 4          # heads
DK = D // H    # head dim
F = 64         # d_ff
L = 2          # n_layers
V = 32         # vocab size
MAX_LEN = 16   # max positional-encoding length
N = B * S      # flattened token count
EPS = 1e-5
MASK_BIAS = -1e30  # large finite negative (avoids -inf edge cases)


# ------------------------------ kernel helpers -------------------------------
def _layernorm(x, g, b):
    mu = jnp.mean(x, axis=-1, keepdims=True)
    var = jnp.mean((x - mu) ** 2, axis=-1, keepdims=True)
    return (x - mu) * lax.rsqrt(var + EPS) * g + b


# --------------------------------- the kernel --------------------------------
def encoder_kernel(ids_ref, emb_ref, pe_ref, bias_ref,
                   wqkv_ref, wo_ref, w1_ref, b1_ref, w2_ref, b2_ref,
                   g1_ref, be1_ref, g2_ref, be2_ref,
                   out_ref):
    # ---- embedding lookup (one-hot matmul -> MXU) + positional encoding ----
    ids = ids_ref[...]                                        # (N, 1) int32
    iota = lax.broadcasted_iota(jnp.int32, (N, V), 1)
    onehot = (ids == iota).astype(jnp.float32)                # (N, V)
    x = jnp.dot(onehot, emb_ref[...], preferred_element_type=jnp.float32)
    x = x + pe_ref[...]                                       # (N, D)

    bias = bias_ref[...]                                      # (N, N) additive mask
    scale = 1.0 / math.sqrt(DK)

    for l in range(L):                                        # n_layers (static)
        # ---- multi-head self attention: fused QKV projection ----
        qkv = jnp.dot(x, wqkv_ref[l], preferred_element_type=jnp.float32)  # (N, 3D)
        wo = wo_ref[l]                                        # (D, D)
        attn = jnp.zeros((N, D), jnp.float32)
        for h in range(H):
            q = qkv[:, h * DK:(h + 1) * DK]
            k = qkv[:, D + h * DK:D + (h + 1) * DK]
            v = qkv[:, 2 * D + h * DK:2 * D + (h + 1) * DK]
            s = jnp.dot(q, k.T, preferred_element_type=jnp.float32) * scale + bias
            m = jnp.max(s, axis=-1, keepdims=True)
            e = jnp.exp(s - m)
            inv = pl.reciprocal(jnp.sum(e, axis=-1, keepdims=True), approx=False)
            p = e * inv
            pv = jnp.dot(p, v, preferred_element_type=jnp.float32)        # (N, DK)
            # accumulate output projection per head (no lane-axis concatenate)
            attn = attn + jnp.dot(pv, wo[h * DK:(h + 1) * DK, :],
                                  preferred_element_type=jnp.float32)
        x = _layernorm(x + attn, g1_ref[l], be1_ref[l])

        # ---- position-wise FFN + residual + norm ----
        h1 = jnp.maximum(
            jnp.dot(x, w1_ref[l], preferred_element_type=jnp.float32) + b1_ref[l],
            0.0)
        ff = jnp.dot(h1, w2_ref[l], preferred_element_type=jnp.float32) + b2_ref[l]
        x = _layernorm(x + ff, g2_ref[l], be2_ref[l])

    out_ref[...] = x                                           # (N, D), one store


# ------------------------------- python wrapper -------------------------------
def encoder_forward(src_ids, src_mask, emb, pe, params):
    (wqkv, wo, w1, b1, w2, b2, g1, be1, g2, be2) = params

    ids_flat = src_ids.reshape(N, 1).astype(jnp.int32)
    pe_tiled = jnp.tile(pe[:S], (B, 1)).astype(jnp.float32)    # (N, D)

    # precompute additive attention bias once (batch block-diagonal + key mask)
    batch_idx = jnp.repeat(jnp.arange(B), S)                   # (N,)
    same_batch = batch_idx[:, None] == batch_idx[None, :]
    key_ok = (src_mask.reshape(N) != 0.0)
    bias = jnp.where(same_batch & key_ok[None, :], 0.0, MASK_BIAS)
    bias = bias.astype(jnp.float32)                            # (N, N)

    vmem = pl.BlockSpec(memory_space=pltpu.MemorySpace.VMEM)
    n_in = 14

    out_flat = pl.pallas_call(
        encoder_kernel,
        out_shape=jax.ShapeDtypeStruct((N, D), jnp.float32),
        in_specs=[vmem] * n_in,
        out_specs=vmem,
    )(ids_flat, emb, pe_tiled, bias,
      wqkv, wo, w1, b1, w2, b2, g1, be1, g2, be2)

    return out_flat.reshape(B, S, D)


# ------------------------------ pure-JAX reference ----------------------------
def _ref_ln(x, g, b):
    mu = x.mean(-1, keepdims=True)
    var = ((x - mu) ** 2).mean(-1, keepdims=True)
    return (x - mu) / jnp.sqrt(var + EPS) * g + b


def encoder_ref(src_ids, src_mask, emb, pe, params):
    (wqkv, wo, w1, b1, w2, b2, g1, be1, g2, be2) = params
    x = emb[src_ids]                       # (B, S, D) embedding lookup
    x = x + pe[:S][None]                   # positional encoding
    mask4 = src_mask[:, None]              # (B, 1, 1, S)
    for l in range(L):
        q = x @ wqkv[l][:, :D]
        k = x @ wqkv[l][:, D:2 * D]
        v = x @ wqkv[l][:, 2 * D:]
        qh = q.reshape(B, S, H, DK).transpose(0, 2, 1, 3)
        kh = k.reshape(B, S, H, DK).transpose(0, 2, 1, 3)
        vh = v.reshape(B, S, H, DK).transpose(0, 2, 1, 3)
        s = jnp.einsum("bhqd,bhkd->bhqk", qh, kh) / math.sqrt(DK)
        s = jnp.where(mask4 == 0.0, -jnp.inf, s)
        p = jax.nn.softmax(s, axis=-1)
        a = jnp.einsum("bhqk,bhkd->bhqd", p, vh)
        a = a.transpose(0, 2, 1, 3).reshape(B, S, D)
        x = _ref_ln(x + a @ wo[l], g1[l], be1[l])
        ff = jnp.maximum(x @ w1[l] + b1[l], 0.0) @ w2[l] + b2[l]
        x = _ref_ln(x + ff, g2[l], be2[l])
    return x


# ------------------------------------ main ------------------------------------
if __name__ == "__main__":
    key = jax.random.PRNGKey(0)
    keys = jax.random.split(key, 12)

    def init(k, shape, scale=0.05):
        return (scale * jax.random.normal(k, shape)).astype(jnp.float32)

    # token ids and source key-padding mask (1 = keep, 0 = masked)
    src_ids = jax.random.randint(keys[0], (B, S), 0, V)
    src_mask = jnp.ones((B, 1, S), jnp.float32)
    src_mask = src_mask.at[1, 0, S - 2:].set(0.0)

    # shared embedding table
    emb = init(keys[1], (V, D), 0.5)

    # sinusoidal positional encoding (same construction as the PyTorch module)
    position = jnp.arange(MAX_LEN, dtype=jnp.float32)[:, None]
    div_term = jnp.exp(jnp.arange(0, D, 2, dtype=jnp.float32)
                       * (-math.log(10000.0) / D))
    pe = jnp.zeros((MAX_LEN, D), jnp.float32)
    pe = pe.at[:, 0::2].set(jnp.sin(position * div_term))
    pe = pe.at[:, 1::2].set(jnp.cos(position * div_term))

    # per-layer params, stacked along a leading layer axis
    params = (
        init(keys[2], (L, D, 3 * D)),          # fused W_q|W_k|W_v
        init(keys[3], (L, D, D)),              # W_o
        init(keys[4], (L, D, F)),              # linear1 weight
        init(keys[5], (L, 1, F)),              # linear1 bias
        init(keys[6], (L, F, D)),              # linear2 weight
        init(keys[7], (L, 1, D)),              # linear2 bias
        jnp.ones((L, 1, D), jnp.float32),      # norm1 gamma
        jnp.zeros((L, 1, D), jnp.float32),     # norm1 beta
        jnp.ones((L, 1, D), jnp.float32),      # norm2 gamma
        jnp.zeros((L, 1, D), jnp.float32),     # norm2 beta
    )

    out = encoder_forward(src_ids, src_mask, emb, pe, params)
    out = jax.block_until_ready(out)

    ref = encoder_ref(src_ids, src_mask, emb, pe, params)
    assert out.shape == (B, S, D)
    assert jnp.allclose(out, ref, atol=1e-4, rtol=1e-4), "mismatch vs reference"

    print("KERNEL_OK")
</pallas_src>

<mosaic_0001>
module attributes {stable_mosaic.version = 11 : i64} {
  func.func @encoder_kernel(%arg0: memref<16x1xi32, #tpu.memory_space<vmem>>, %arg1: memref<32x32xf32, #tpu.memory_space<vmem>>, %arg2: memref<16x32xf32, #tpu.memory_space<vmem>>, %arg3: memref<16x16xf32, #tpu.memory_space<vmem>>, %arg4: memref<2x32x96xf32, #tpu.memory_space<vmem>>, %arg5: memref<2x32x32xf32, #tpu.memory_space<vmem>>, %arg6: memref<2x32x64xf32, #tpu.memory_space<vmem>>, %arg7: memref<2x1x64xf32, #tpu.memory_space<vmem>>, %arg8: memref<2x64x32xf32, #tpu.memory_space<vmem>>, %arg9: memref<2x1x32xf32, #tpu.memory_space<vmem>>, %arg10: memref<2x1x32xf32, #tpu.memory_space<vmem>>, %arg11: memref<2x1x32xf32, #tpu.memory_space<vmem>>, %arg12: memref<2x1x32xf32, #tpu.memory_space<vmem>>, %arg13: memref<2x1x32xf32, #tpu.memory_space<vmem>>, %arg14: memref<16x32xf32, #tpu.memory_space<vmem>>) attributes {dimension_semantics = [], scalar_prefetch = 0 : i64, scratch_operands = 0 : i64, tpu.core_type = #tpu.core_type<tc>} {
    %c0 = arith.constant 0 : index
    %c0_0 = arith.constant 0 : index
    %0 = vector.load %arg0[%c0, %c0_0] : memref<16x1xi32, #tpu.memory_space<vmem>>, vector<16x1xi32>
    %1 = tpu.iota {dimensions = array<i32: 1>} : vector<16x32xi32>
    %2 = vector.broadcast %0 : vector<16x1xi32> to vector<16x32xi32>
    %3 = arith.cmpi eq, %2, %1 : vector<16x32xi32>
    %4 = arith.extui %3 : vector<16x32xi1> to vector<16x32xi32>
    %5 = arith.sitofp %4 : vector<16x32xi32> to vector<16x32xf32>
    %c0_1 = arith.constant 0 : index
    %c0_2 = arith.constant 0 : index
    %6 = vector.load %arg1[%c0_1, %c0_2] : memref<32x32xf32, #tpu.memory_space<vmem>>, vector<32x32xf32>
    %cst = arith.constant dense<0.000000e+00> : vector<16x32xf32>
    %7 = tpu.matmul %5, %6, %cst {dimension_numbers = #tpu.dot_dimension_numbers<[1], [0], [0], [1], [0, 0, 1, 1], [], []>} : vector<16x32xf32>, vector<32x32xf32>, vector<16x32xf32> -> vector<16x32xf32>
    %c0_3 = arith.constant 0 : index
    %c0_4 = arith.constant 0 : index
    %8 = vector.load %arg2[%c0_3, %c0_4] : memref<16x32xf32, #tpu.memory_space<vmem>>, vector<16x32xf32>
    %9 = arith.addf %7, %8 : vector<16x32xf32>
    %c0_5 = arith.constant 0 : index
    %c0_6 = arith.constant 0 : index
    %10 = vector.load %arg3[%c0_5, %c0_6] : memref<16x16xf32, #tpu.memory_space<vmem>>, vector<16x16xf32>
    %c0_7 = arith.constant 0 : index
    %c0_8 = arith.constant 0 : index
    %c0_9 = arith.constant 0 : index
    %11 = vector.load %arg4[%c0_7, %c0_8, %c0_9] : memref<2x32x96xf32, #tpu.memory_space<vmem>>, vector<1x32x96xf32>
    %12 = vector.shape_cast %11 : vector<1x32x96xf32> to vector<32x96xf32>
    %cst_10 = arith.constant dense<0.000000e+00> : vector<16x96xf32>
    %13 = tpu.matmul %9, %12, %cst_10 {dimension_numbers = #tpu.dot_dimension_numbers<[1], [0], [0], [1], [0, 0, 1, 1], [], []>} : vector<16x32xf32>, vector<32x96xf32>, vector<16x96xf32> -> vector<16x96xf32>
    %c0_11 = arith.constant 0 : index
    %c0_12 = arith.constant 0 : index
    %c0_13 = arith.constant 0 : index
    %14 = vector.load %arg5[%c0_11, %c0_12, %c0_13] : memref<2x32x32xf32, #tpu.memory_space<vmem>>, vector<1x32x32xf32>
    %15 = vector.shape_cast %14 : vector<1x32x32xf32> to vector<32x32xf32>
    %cst_14 = arith.constant 0.000000e+00 : f32
    %16 = vector.broadcast %cst_14 : f32 to vector<16x32xf32>
    %17 = vector.extract_strided_slice %13 {offsets = [0, 0], sizes = [16, 8], strides = [1, 1]} : vector<16x96xf32> to vector<16x8xf32>
    %18 = vector.extract_strided_slice %13 {offsets = [0, 32], sizes = [16, 8], strides = [1, 1]} : vector<16x96xf32> to vector<16x8xf32>
    %19 = vector.extract_strided_slice %13 {offsets = [0, 64], sizes = [16, 8], strides = [1, 1]} : vector<16x96xf32> to vector<16x8xf32>
    %20 = tpu.transpose %18, [1, 0] : vector<16x8xf32> -> vector<8x16xf32>
    %cst_15 = arith.constant dense<0.000000e+00> : vector<16x16xf32>
    %21 = tpu.matmul %17, %20, %cst_15 {dimension_numbers = #tpu.dot_dimension_numbers<[1], [0], [0], [1], [0, 0, 1, 1], [], []>} : vector<16x8xf32>, vector<8x16xf32>, vector<16x16xf32> -> vector<16x16xf32>
    %cst_16 = arith.constant 0.353553385 : f32
    %22 = vector.broadcast %cst_16 : f32 to vector<16x16xf32>
    %23 = arith.mulf %21, %22 : vector<16x16xf32>
    %24 = arith.addf %23, %10 : vector<16x16xf32>
    %cst_17 = arith.constant dense<0xFF800000> : vector<16xf32>
    %25 = vector.multi_reduction <maximumf>, %24, %cst_17 [1] : vector<16x16xf32> to vector<16xf32>
    %26 = vector.shape_cast %25 : vector<16xf32> to vector<16x1xf32>
    %27 = vector.broadcast %26 : vector<16x1xf32> to vector<16x16xf32>
    %28 = arith.subf %24, %27 : vector<16x16xf32>
    %29 = math.exp %28 : vector<16x16xf32>
    %cst_18 = arith.constant dense<0.000000e+00> : vector<16xf32>
    %30 = vector.multi_reduction <add>, %29, %cst_18 [1] : vector<16x16xf32> to vector<16xf32>
    %31 = vector.shape_cast %30 : vector<16xf32> to vector<16x1xf32>
    %32 = tpu.reciprocal %31 : vector<16x1xf32> -> vector<16x1xf32>
    %33 = vector.broadcast %32 : vector<16x1xf32> to vector<16x16xf32>
    %34 = arith.mulf %29, %33 : vector<16x16xf32>
    %cst_19 = arith.constant dense<0.000000e+00> : vector<16x8xf32>
    %35 = tpu.matmul %34, %19, %cst_19 {dimension_numbers = #tpu.dot_dimension_numbers<[1], [0], [0], [1], [0, 0, 1, 1], [], []>} : vector<16x16xf32>, vector<16x8xf32>, vector<16x8xf32> -> vector<16x8xf32>
    %36 = vector.extract_strided_slice %15 {offsets = [0, 0], sizes = [8, 32], strides = [1, 1]} : vector<32x32xf32> to vector<8x32xf32>
    %cst_20 = arith.constant dense<0.000000e+00> : vector<16x32xf32>
    %37 = tpu.matmul %35, %36, %cst_20 {dimension_numbers = #tpu.dot_dimension_numbers<[1], [0], [0], [1], [0, 0, 1, 1], [], []>} : vector<16x8xf32>, vector<8x32xf32>, vector<16x32xf32> -> vector<16x32xf32>
    %38 = arith.addf %16, %37 : vector<16x32xf32>
    %39 = vector.extract_strided_slice %13 {offsets = [0, 8], sizes = [16, 8], strides = [1, 1]} : vector<16x96xf32> to vector<16x8xf32>
    %40 = vector.extract_strided_slice %13 {offsets = [0, 40], sizes = [16, 8], strides = [1, 1]} : vector<16x96xf32> to vector<16x8xf32>
    %41 = vector.extract_strided_slice %13 {offsets = [0, 72], sizes = [16, 8], strides = [1, 1]} : vector<16x96xf32> to vector<16x8xf32>
    %42 = tpu.transpose %40, [1, 0] : vector<16x8xf32> -> vector<8x16xf32>
    %cst_21 = arith.constant dense<0.000000e+00> : vector<16x16xf32>
    %43 = tpu.matmul %39, %42, %cst_21 {dimension_numbers = #tpu.dot_dimension_numbers<[1], [0], [0], [1], [0, 0, 1, 1], [], []>} : vector<16x8xf32>, vector<8x16xf32>, vector<16x16xf32> -> vector<16x16xf32>
    %cst_22 = arith.constant 0.353553385 : f32
    %44 = vector.broadcast %cst_22 : f32 to vector<16x16xf32>
    %45 = arith.mulf %43, %44 : vector<16x16xf32>
    %46 = arith.addf %45, %10 : vector<16x16xf32>
    %cst_23 = arith.constant dense<0xFF800000> : vector<16xf32>
    %47 = vector.multi_reduction <maximumf>, %46, %cst_23 [1] : vector<16x16xf32> to vector<16xf32>
    %48 = vector.shape_cast %47 : vector<16xf32> to vector<16x1xf32>
    %49 = vector.broadcast %48 : vector<16x1xf32> to vector<16x16xf32>
    %50 = arith.subf %46, %49 : vector<16x16xf32>
    %51 = math.exp %50 : vector<16x16xf32>
    %cst_24 = arith.constant dense<0.000000e+00> : vector<16xf32>
    %52 = vector.multi_reduction <add>, %51, %cst_24 [1] : vector<16x16xf32> to vector<16xf32>
    %53 = vector.shape_cast %52 : vector<16xf32> to vector<16x1xf32>
    %54 = tpu.reciprocal %53 : vector<16x1xf32> -> vector<16x1xf32>
    %55 = vector.broadcast %54 : vector<16x1xf32> to vector<16x16xf32>
    %56 = arith.mulf %51, %55 : vector<16x16xf32>
    %cst_25 = arith.constant dense<0.000000e+00> : vector<16x8xf32>
    %57 = tpu.matmul %56, %41, %cst_25 {dimension_numbers = #tpu.dot_dimension_numbers<[1], [0], [0], [1], [0, 0, 1, 1], [], []>} : vector<16x16xf32>, vector<16x8xf32>, vector<16x8xf32> -> vector<16x8xf32>
    %58 = vector.extract_strided_slice %15 {offsets = [8, 0], sizes = [8, 32], strides = [1, 1]} : vector<32x32xf32> to vector<8x32xf32>
    %cst_26 = arith.constant dense<0.000000e+00> : vector<16x32xf32>
    %59 = tpu.matmul %57, %58, %cst_26 {dimension_numbers = #tpu.dot_dimension_numbers<[1], [0], [0], [1], [0, 0, 1, 1], [], []>} : vector<16x8xf32>, vector<8x32xf32>, vector<16x32xf32> -> vector<16x32xf32>
    %60 = arith.addf %38, %59 : vector<16x32xf32>
    %61 = vector.extract_strided_slice %13 {offsets = [0, 16], sizes = [16, 8], strides = [1, 1]} : vector<16x96xf32> to vector<16x8xf32>
    %62 = vector.extract_strided_slice %13 {offsets = [0, 48], sizes = [16, 8], strides = [1, 1]} : vector<16x96xf32> to vector<16x8xf32>
    %63 = vector.extract_strided_slice %13 {offsets = [0, 80], sizes = [16, 8], strides = [1, 1]} : vector<16x96xf32> to vector<16x8xf32>
    %64 = tpu.transpose %62, [1, 0] : vector<16x8xf32> -> vector<8x16xf32>
    %cst_27 = arith.constant dense<0.000000e+00> : vector<16x16xf32>
    %65 = tpu.matmul %61, %64, %cst_27 {dimension_numbers = #tpu.dot_dimension_numbers<[1], [0], [0], [1], [0, 0, 1, 1], [], []>} : vector<16x8xf32>, vector<8x16xf32>, vector<16x16xf32> -> vector<16x16xf32>
    %cst_28 = arith.constant 0.353553385 : f32
    %66 = vector.broadcast %cst_28 : f32 to vector<16x16xf32>
    %67 = arith.mulf %65, %66 : vector<16x16xf32>
    %68 = arith.addf %67, %10 : vector<16x16xf32>
    %cst_29 = arith.constant dense<0xFF800000> : vector<16xf32>
    %69 = vector.multi_reduction <maximumf>, %68, %cst_29 [1] : vector<16x16xf32> to vector<16xf32>
    %70 = vector.shape_cast %69 : vector<16xf32> to vector<16x1xf32>
    %71 = vector.broadcast %70 : vector<16x1xf32> to vector<16x16xf32>
    %72 = arith.subf %68, %71 : vector<16x16xf32>
    %73 = math.exp %72 : vector<16x16xf32>
    %cst_30 = arith.constant dense<0.000000e+00> : vector<16xf32>
    %74 = vector.multi_reduction <add>, %73, %cst_30 [1] : vector<16x16xf32> to vector<16xf32>
    %75 = vector.shape_cast %74 : vector<16xf32> to vector<16x1xf32>
    %76 = tpu.reciprocal %75 : vector<16x1xf32> -> vector<16x1xf32>
    %77 = vector.broadcast %76 : vector<16x1xf32> to vector<16x16xf32>
    %78 = arith.mulf %73, %77 : vector<16x16xf32>
    %cst_31 = arith.constant dense<0.000000e+00> : vector<16x8xf32>
    %79 = tpu.matmul %78, %63, %cst_31 {dimension_numbers = #tpu.dot_dimension_numbers<[1], [0], [0], [1], [0, 0, 1, 1], [], []>} : vector<16x16xf32>, vector<16x8xf32>, vector<16x8xf32> -> vector<16x8xf32>
    %80 = vector.extract_strided_slice %15 {offsets = [16, 0], sizes = [8, 32], strides = [1, 1]} : vector<32x32xf32> to vector<8x32xf32>
    %cst_32 = arith.constant dense<0.000000e+00> : vector<16x32xf32>
    %81 = tpu.matmul %79, %80, %cst_32 {dimension_numbers = #tpu.dot_dimension_numbers<[1], [0], [0], [1], [0, 0, 1, 1], [], []>} : vector<16x8xf32>, vector<8x32xf32>, vector<16x32xf32> -> vector<16x32xf32>
    %82 = arith.addf %60, %81 : vector<16x32xf32>
    %83 = vector.extract_strided_slice %13 {offsets = [0, 24], sizes = [16, 8], strides = [1, 1]} : vector<16x96xf32> to vector<16x8xf32>
    %84 = vector.extract_strided_slice %13 {offsets = [0, 56], sizes = [16, 8], strides = [1, 1]} : vector<16x96xf32> to vector<16x8xf32>
    %85 = vector.extract_strided_slice %13 {offsets = [0, 88], sizes = [16, 8], strides = [1, 1]} : vector<16x96xf32> to vector<16x8xf32>
    %86 = tpu.transpose %84, [1, 0] : vector<16x8xf32> -> vector<8x16xf32>
    %cst_33 = arith.constant dense<0.000000e+00> : vector<16x16xf32>
    %87 = tpu.matmul %83, %86, %cst_33 {dimension_numbers = #tpu.dot_dimension_numbers<[1], [0], [0], [1], [0, 0, 1, 1], [], []>} : vector<16x8xf32>, vector<8x16xf32>, vector<16x16xf32> -> vector<16x16xf32>
    %cst_34 = arith.constant 0.353553385 : f32
    %88 = vector.broadcast %cst_34 : f32 to vector<16x16xf32>
    %89 = arith.mulf %87, %88 : vector<16x16xf32>
    %90 = arith.addf %89, %10 : vector<16x16xf32>
    %cst_35 = arith.constant dense<0xFF800000> : vector<16xf32>
    %91 = vector.multi_reduction <maximumf>, %90, %cst_35 [1] : vector<16x16xf32> to vector<16xf32>
    %92 = vector.shape_cast %91 : vector<16xf32> to vector<16x1xf32>
    %93 = vector.broadcast %92 : vector<16x1xf32> to vector<16x16xf32>
    %94 = arith.subf %90, %93 : vector<16x16xf32>
    %95 = math.exp %94 : vector<16x16xf32>
    %cst_36 = arith.constant dense<0.000000e+00> : vector<16xf32>
    %96 = vector.multi_reduction <add>, %95, %cst_36 [1] : vector<16x16xf32> to vector<16xf32>
    %97 = vector.shape_cast %96 : vector<16xf32> to vector<16x1xf32>
    %98 = tpu.reciprocal %97 : vector<16x1xf32> -> vector<16x1xf32>
    %99 = vector.broadcast %98 : vector<16x1xf32> to vector<16x16xf32>
    %100 = arith.mulf %95, %99 : vector<16x16xf32>
    %cst_37 = arith.constant dense<0.000000e+00> : vector<16x8xf32>
    %101 = tpu.matmul %100, %85, %cst_37 {dimension_numbers = #tpu.dot_dimension_numbers<[1], [0], [0], [1], [0, 0, 1, 1], [], []>} : vector<16x16xf32>, vector<16x8xf32>, vector<16x8xf32> -> vector<16x8xf32>
    %102 = vector.extract_strided_slice %15 {offsets = [24, 0], sizes = [8, 32], strides = [1, 1]} : vector<32x32xf32> to vector<8x32xf32>
    %cst_38 = arith.constant dense<0.000000e+00> : vector<16x32xf32>
    %103 = tpu.matmul %101, %102, %cst_38 {dimension_numbers = #tpu.dot_dimension_numbers<[1], [0], [0], [1], [0, 0, 1, 1], [], []>} : vector<16x8xf32>, vector<8x32xf32>, vector<16x32xf32> -> vector<16x32xf32>
    %104 = arith.addf %82, %103 : vector<16x32xf32>
    %105 = arith.addf %9, %104 : vector<16x32xf32>
    %c0_39 = arith.constant 0 : index
    %c0_40 = arith.constant 0 : index
    %c0_41 = arith.constant 0 : index
    %106 = vector.load %arg10[%c0_39, %c0_40, %c0_41] : memref<2x1x32xf32, #tpu.memory_space<vmem>>, vector<1x1x32xf32>
    %107 = vector.shape_cast %106 : vector<1x1x32xf32> to vector<1x32xf32>
    %c0_42 = arith.constant 0 : index
    %c0_43 = arith.constant 0 : index
    %c0_44 = arith.constant 0 : index
    %108 = vector.load %arg11[%c0_42, %c0_43, %c0_44] : memref<2x1x32xf32, #tpu.memory_space<vmem>>, vector<1x1x32xf32>
    %109 = vector.shape_cast %108 : vector<1x1x32xf32> to vector<1x32xf32>
    %cst_45 = arith.constant dense<0.000000e+00> : vector<16xf32>
    %110 = vector.multi_reduction <add>, %105, %cst_45 [1] : vector<16x32xf32> to vector<16xf32>
    %111 = vector.shape_cast %110 : vector<16xf32> to vector<16x1xf32>
    %cst_46 = arith.constant 3.200000e+01 : f32
    %112 = vector.broadcast %cst_46 : f32 to vector<16x1xf32>
    %113 = arith.divf %111, %112 : vector<16x1xf32>
    %114 = vector.broadcast %113 : vector<16x1xf32> to vector<16x32xf32>
    %115 = arith.subf %105, %114 : vector<16x32xf32>
    %116 = arith.mulf %115, %115 : vector<16x32xf32>
    %cst_47 = arith.constant dense<0.000000e+00> : vector<16xf32>
    %117 = vector.multi_reduction <add>, %116, %cst_47 [1] : vector<16x32xf32> to vector<16xf32>
    %118 = vector.shape_cast %117 : vector<16xf32> to vector<16x1xf32>
    %cst_48 = arith.constant 3.200000e+01 : f32
    %119 = vector.broadcast %cst_48 : f32 to vector<16x1xf32>
    %120 = arith.divf %118, %119 : vector<16x1xf32>
    %121 = vector.broadcast %113 : vector<16x1xf32> to vector<16x32xf32>
    %122 = arith.subf %105, %121 : vector<16x32xf32>
    %cst_49 = arith.constant 9.99999974E-6 : f32
    %123 = vector.broadcast %cst_49 : f32 to vector<16x1xf32>
    %124 = arith.addf %120, %123 : vector<16x1xf32>
    %125 = math.rsqrt %124 : vector<16x1xf32>
    %126 = vector.broadcast %125 : vector<16x1xf32> to vector<16x32xf32>
    %127 = arith.mulf %122, %126 : vector<16x32xf32>
    %128 = vector.broadcast %107 : vector<1x32xf32> to vector<16x32xf32>
    %129 = arith.mulf %127, %128 : vector<16x32xf32>
    %130 = vector.broadcast %109 : vector<1x32xf32> to vector<16x32xf32>
    %131 = arith.addf %129, %130 : vector<16x32xf32>
    %c0_50 = arith.constant 0 : index
    %c0_51 = arith.constant 0 : index
    %c0_52 = arith.constant 0 : index
    %132 = vector.load %arg6[%c0_50, %c0_51, %c0_52] : memref<2x32x64xf32, #tpu.memory_space<vmem>>, vector<1x32x64xf32>
    %133 = vector.shape_cast %132 : vector<1x32x64xf32> to vector<32x64xf32>
    %cst_53 = arith.constant dense<0.000000e+00> : vector<16x64xf32>
    %134 = tpu.matmul %131, %133, %cst_53 {dimension_numbers = #tpu.dot_dimension_numbers<[1], [0], [0], [1], [0, 0, 1, 1], [], []>} : vector<16x32xf32>, vector<32x64xf32>, vector<16x64xf32> -> vector<16x64xf32>
    %c0_54 = arith.constant 0 : index
    %c0_55 = arith.constant 0 : index
    %c0_56 = arith.constant 0 : index
    %135 = vector.load %arg7[%c0_54, %c0_55, %c0_56] : memref<2x1x64xf32, #tpu.memory_space<vmem>>, vector<1x1x64xf32>
    %136 = vector.shape_cast %135 : vector<1x1x64xf32> to vector<1x64xf32>
    %137 = vector.broadcast %136 : vector<1x64xf32> to vector<16x64xf32>
    %138 = arith.addf %134, %137 : vector<16x64xf32>
    %cst_57 = arith.constant 0.000000e+00 : f32
    %139 = vector.broadcast %cst_57 : f32 to vector<16x64xf32>
    %140 = arith.maximumf %138, %139 : vector<16x64xf32>
    %c0_58 = arith.constant 0 : index
    %c0_59 = arith.constant 0 : index
    %c0_60 = arith.constant 0 : index
    %141 = vector.load %arg8[%c0_58, %c0_59, %c0_60] : memref<2x64x32xf32, #tpu.memory_space<vmem>>, vector<1x64x32xf32>
    %142 = vector.shape_cast %141 : vector<1x64x32xf32> to vector<64x32xf32>
    %cst_61 = arith.constant dense<0.000000e+00> : vector<16x32xf32>
    %143 = tpu.matmul %140, %142, %cst_61 {dimension_numbers = #tpu.dot_dimension_numbers<[1], [0], [0], [1], [0, 0, 1, 1], [], []>} : vector<16x64xf32>, vector<64x32xf32>, vector<16x32xf32> -> vector<16x32xf32>
    %c0_62 = arith.constant 0 : index
    %c0_63 = arith.constant 0 : index
    %c0_64 = arith.constant 0 : index
    %144 = vector.load %arg9[%c0_62, %c0_63, %c0_64] : memref<2x1x32xf32, #tpu.memory_space<vmem>>, vector<1x1x32xf32>
    %145 = vector.shape_cast %144 : vector<1x1x32xf32> to vector<1x32xf32>
    %146 = vector.broadcast %145 : vector<1x32xf32> to vector<16x32xf32>
    %147 = arith.addf %143, %146 : vector<16x32xf32>
    %148 = arith.addf %131, %147 : vector<16x32xf32>
    %c0_65 = arith.constant 0 : index
    %c0_66 = arith.constant 0 : index
    %c0_67 = arith.constant 0 : index
    %149 = vector.load %arg12[%c0_65, %c0_66, %c0_67] : memref<2x1x32xf32, #tpu.memory_space<vmem>>, vector<1x1x32xf32>
    %150 = vector.shape_cast %149 : vector<1x1x32xf32> to vector<1x32xf32>
    %c0_68 = arith.constant 0 : index
    %c0_69 = arith.constant 0 : index
    %c0_70 = arith.constant 0 : index
    %151 = vector.load %arg13[%c0_68, %c0_69, %c0_70] : memref<2x1x32xf32, #tpu.memory_space<vmem>>, vector<1x1x32xf32>
    %152 = vector.shape_cast %151 : vector<1x1x32xf32> to vector<1x32xf32>
    %cst_71 = arith.constant dense<0.000000e+00> : vector<16xf32>
    %153 = vector.multi_reduction <add>, %148, %cst_71 [1] : vector<16x32xf32> to vector<16xf32>
    %154 = vector.shape_cast %153 : vector<16xf32> to vector<16x1xf32>
    %cst_72 = arith.constant 3.200000e+01 : f32
    %155 = vector.broadcast %cst_72 : f32 to vector<16x1xf32>
    %156 = arith.divf %154, %155 : vector<16x1xf32>
    %157 = vector.broadcast %156 : vector<16x1xf32> to vector<16x32xf32>
    %158 = arith.subf %148, %157 : vector<16x32xf32>
    %159 = arith.mulf %158, %158 : vector<16x32xf32>
    %cst_73 = arith.constant dense<0.000000e+00> : vector<16xf32>
    %160 = vector.multi_reduction <add>, %159, %cst_73 [1] : vector<16x32xf32> to vector<16xf32>
    %161 = vector.shape_cast %160 : vector<16xf32> to vector<16x1xf32>
    %cst_74 = arith.constant 3.200000e+01 : f32
    %162 = vector.broadcast %cst_74 : f32 to vector<16x1xf32>
    %163 = arith.divf %161, %162 : vector<16x1xf32>
    %164 = vector.broadcast %156 : vector<16x1xf32> to vector<16x32xf32>
    %165 = arith.subf %148, %164 : vector<16x32xf32>
    %cst_75 = arith.constant 9.99999974E-6 : f32
    %166 = vector.broadcast %cst_75 : f32 to vector<16x1xf32>
    %167 = arith.addf %163, %166 : vector<16x1xf32>
    %168 = math.rsqrt %167 : vector<16x1xf32>
    %169 = vector.broadcast %168 : vector<16x1xf32> to vector<16x32xf32>
    %170 = arith.mulf %165, %169 : vector<16x32xf32>
    %171 = vector.broadcast %150 : vector<1x32xf32> to vector<16x32xf32>
    %172 = arith.mulf %170, %171 : vector<16x32xf32>
    %173 = vector.broadcast %152 : vector<1x32xf32> to vector<16x32xf32>
    %174 = arith.addf %172, %173 : vector<16x32xf32>
    %c1 = arith.constant 1 : index
    %c0_76 = arith.constant 0 : index
    %c0_77 = arith.constant 0 : index
    %175 = vector.load %arg4[%c1, %c0_76, %c0_77] : memref<2x32x96xf32, #tpu.memory_space<vmem>>, vector<1x32x96xf32>
    %176 = vector.shape_cast %175 : vector<1x32x96xf32> to vector<32x96xf32>
    %cst_78 = arith.constant dense<0.000000e+00> : vector<16x96xf32>
    %177 = tpu.matmul %174, %176, %cst_78 {dimension_numbers = #tpu.dot_dimension_numbers<[1], [0], [0], [1], [0, 0, 1, 1], [], []>} : vector<16x32xf32>, vector<32x96xf32>, vector<16x96xf32> -> vector<16x96xf32>
    %c1_79 = arith.constant 1 : index
    %c0_80 = arith.constant 0 : index
    %c0_81 = arith.constant 0 : index
    %178 = vector.load %arg5[%c1_79, %c0_80, %c0_81] : memref<2x32x32xf32, #tpu.memory_space<vmem>>, vector<1x32x32xf32>
    %179 = vector.shape_cast %178 : vector<1x32x32xf32> to vector<32x32xf32>
    %cst_82 = arith.constant 0.000000e+00 : f32
    %180 = vector.broadcast %cst_82 : f32 to vector<16x32xf32>
    %181 = vector.extract_strided_slice %177 {offsets = [0, 0], sizes = [16, 8], strides = [1, 1]} : vector<16x96xf32> to vector<16x8xf32>
    %182 = vector.extract_strided_slice %177 {offsets = [0, 32], sizes = [16, 8], strides = [1, 1]} : vector<16x96xf32> to vector<16x8xf32>
    %183 = vector.extract_strided_slice %177 {offsets = [0, 64], sizes = [16, 8], strides = [1, 1]} : vector<16x96xf32> to vector<16x8xf32>
    %184 = tpu.transpose %182, [1, 0] : vector<16x8xf32> -> vector<8x16xf32>
    %cst_83 = arith.constant dense<0.000000e+00> : vector<16x16xf32>
    %185 = tpu.matmul %181, %184, %cst_83 {dimension_numbers = #tpu.dot_dimension_numbers<[1], [0], [0], [1], [0, 0, 1, 1], [], []>} : vector<16x8xf32>, vector<8x16xf32>, vector<16x16xf32> -> vector<16x16xf32>
    %cst_84 = arith.constant 0.353553385 : f32
    %186 = vector.broadcast %cst_84 : f32 to vector<16x16xf32>
    %187 = arith.mulf %185, %186 : vector<16x16xf32>
    %188 = arith.addf %187, %10 : vector<16x16xf32>
    %cst_85 = arith.constant dense<0xFF800000> : vector<16xf32>
    %189 = vector.multi_reduction <maximumf>, %188, %cst_85 [1] : vector<16x16xf32> to vector<16xf32>
    %190 = vector.shape_cast %189 : vector<16xf32> to vector<16x1xf32>
    %191 = vector.broadcast %190 : vector<16x1xf32> to vector<16x16xf32>
    %192 = arith.subf %188, %191 : vector<16x16xf32>
    %193 = math.exp %192 : vector<16x16xf32>
    %cst_86 = arith.constant dense<0.000000e+00> : vector<16xf32>
    %194 = vector.multi_reduction <add>, %193, %cst_86 [1] : vector<16x16xf32> to vector<16xf32>
    %195 = vector.shape_cast %194 : vector<16xf32> to vector<16x1xf32>
    %196 = tpu.reciprocal %195 : vector<16x1xf32> -> vector<16x1xf32>
    %197 = vector.broadcast %196 : vector<16x1xf32> to vector<16x16xf32>
    %198 = arith.mulf %193, %197 : vector<16x16xf32>
    %cst_87 = arith.constant dense<0.000000e+00> : vector<16x8xf32>
    %199 = tpu.matmul %198, %183, %cst_87 {dimension_numbers = #tpu.dot_dimension_numbers<[1], [0], [0], [1], [0, 0, 1, 1], [], []>} : vector<16x16xf32>, vector<16x8xf32>, vector<16x8xf32> -> vector<16x8xf32>
    %200 = vector.extract_strided_slice %179 {offsets = [0, 0], sizes = [8, 32], strides = [1, 1]} : vector<32x32xf32> to vector<8x32xf32>
    %cst_88 = arith.constant dense<0.000000e+00> : vector<16x32xf32>
    %201 = tpu.matmul %199, %200, %cst_88 {dimension_numbers = #tpu.dot_dimension_numbers<[1], [0], [0], [1], [0, 0, 1, 1], [], []>} : vector<16x8xf32>, vector<8x32xf32>, vector<16x32xf32> -> vector<16x32xf32>
    %202 = arith.addf %180, %201 : vector<16x32xf32>
    %203 = vector.extract_strided_slice %177 {offsets = [0, 8], sizes = [16, 8], strides = [1, 1]} : vector<16x96xf32> to vector<16x8xf32>
    %204 = vector.extract_strided_slice %177 {offsets = [0, 40], sizes = [16, 8], strides = [1, 1]} : vector<16x96xf32> to vector<16x8xf32>
    %205 = vector.extract_strided_slice %177 {offsets = [0, 72], sizes = [16, 8], strides = [1, 1]} : vector<16x96xf32> to vector<16x8xf32>
    %206 = tpu.transpose %204, [1, 0] : vector<16x8xf32> -> vector<8x16xf32>
    %cst_89 = arith.constant dense<0.000000e+00> : vector<16x16xf32>
    %207 = tpu.matmul %203, %206, %cst_89 {dimension_numbers = #tpu.dot_dimension_numbers<[1], [0], [0], [1], [0, 0, 1, 1], [], []>} : vector<16x8xf32>, vector<8x16xf32>, vector<16x16xf32> -> vector<16x16xf32>
    %cst_90 = arith.constant 0.353553385 : f32
    %208 = vector.broadcast %cst_90 : f32 to vector<16x16xf32>
    %209 = arith.mulf %207, %208 : vector<16x16xf32>
    %210 = arith.addf %209, %10 : vector<16x16xf32>
    %cst_91 = arith.constant dense<0xFF800000> : vector<16xf32>
    %211 = vector.multi_reduction <maximumf>, %210, %cst_91 [1] : vector<16x16xf32> to vector<16xf32>
    %212 = vector.shape_cast %211 : vector<16xf32> to vector<16x1xf32>
    %213 = vector.broadcast %212 : vector<16x1xf32> to vector<16x16xf32>
    %214 = arith.subf %210, %213 : vector<16x16xf32>
    %215 = math.exp %214 : vector<16x16xf32>
    %cst_92 = arith.constant dense<0.000000e+00> : vector<16xf32>
    %216 = vector.multi_reduction <add>, %215, %cst_92 [1] : vector<16x16xf32> to vector<16xf32>
    %217 = vector.shape_cast %216 : vector<16xf32> to vector<16x1xf32>
    %218 = tpu.reciprocal %217 : vector<16x1xf32> -> vector<16x1xf32>
    %219 = vector.broadcast %218 : vector<16x1xf32> to vector<16x16xf32>
    %220 = arith.mulf %215, %219 : vector<16x16xf32>
    %cst_93 = arith.constant dense<0.000000e+00> : vector<16x8xf32>
    %221 = tpu.matmul %220, %205, %cst_93 {dimension_numbers = #tpu.dot_dimension_numbers<[1], [0], [0], [1], [0, 0, 1, 1], [], []>} : vector<16x16xf32>, vector<16x8xf32>, vector<16x8xf32> -> vector<16x8xf32>
    %222 = vector.extract_strided_slice %179 {offsets = [8, 0], sizes = [8, 32], strides = [1, 1]} : vector<32x32xf32> to vector<8x32xf32>
    %cst_94 = arith.constant dense<0.000000e+00> : vector<16x32xf32>
    %223 = tpu.matmul %221, %222, %cst_94 {dimension_numbers = #tpu.dot_dimension_numbers<[1], [0], [0], [1], [0, 0, 1, 1], [], []>} : vector<16x8xf32>, vector<8x32xf32>, vector<16x32xf32> -> vector<16x32xf32>
    %224 = arith.addf %202, %223 : vector<16x32xf32>
    %225 = vector.extract_strided_slice %177 {offsets = [0, 16], sizes = [16, 8], strides = [1, 1]} : vector<16x96xf32> to vector<16x8xf32>
    %226 = vector.extract_strided_slice %177 {offsets = [0, 48], sizes = [16, 8], strides = [1, 1]} : vector<16x96xf32> to vector<16x8xf32>
    %227 = vector.extract_strided_slice %177 {offsets = [0, 80], sizes = [16, 8], strides = [1, 1]} : vector<16x96xf32> to vector<16x8xf32>
    %228 = tpu.transpose %226, [1, 0] : vector<16x8xf32> -> vector<8x16xf32>
    %cst_95 = arith.constant dense<0.000000e+00> : vector<16x16xf32>
    %229 = tpu.matmul %225, %228, %cst_95 {dimension_numbers = #tpu.dot_dimension_numbers<[1], [0], [0], [1], [0, 0, 1, 1], [], []>} : vector<16x8xf32>, vector<8x16xf32>, vector<16x16xf32> -> vector<16x16xf32>
    %cst_96 = arith.constant 0.353553385 : f32
    %230 = vector.broadcast %cst_96 : f32 to vector<16x16xf32>
    %231 = arith.mulf %229, %230 : vector<16x16xf32>
    %232 = arith.addf %231, %10 : vector<16x16xf32>
    %cst_97 = arith.constant dense<0xFF800000> : vector<16xf32>
    %233 = vector.multi_reduction <maximumf>, %232, %cst_97 [1] : vector<16x16xf32> to vector<16xf32>
    %234 = vector.shape_cast %233 : vector<16xf32> to vector<16x1xf32>
    %235 = vector.broadcast %234 : vector<16x1xf32> to vector<16x16xf32>
    %236 = arith.subf %232, %235 : vector<16x16xf32>
    %237 = math.exp %236 : vector<16x16xf32>
    %cst_98 = arith.constant dense<0.000000e+00> : vector<16xf32>
    %238 = vector.multi_reduction <add>, %237, %cst_98 [1] : vector<16x16xf32> to vector<16xf32>
    %239 = vector.shape_cast %238 : vector<16xf32> to vector<16x1xf32>
    %240 = tpu.reciprocal %239 : vector<16x1xf32> -> vector<16x1xf32>
    %241 = vector.broadcast %240 : vector<16x1xf32> to vector<16x16xf32>
    %242 = arith.mulf %237, %241 : vector<16x16xf32>
    %cst_99 = arith.constant dense<0.000000e+00> : vector<16x8xf32>
    %243 = tpu.matmul %242, %227, %cst_99 {dimension_numbers = #tpu.dot_dimension_numbers<[1], [0], [0], [1], [0, 0, 1, 1], [], []>} : vector<16x16xf32>, vector<16x8xf32>, vector<16x8xf32> -> vector<16x8xf32>
    %244 = vector.extract_strided_slice %179 {offsets = [16, 0], sizes = [8, 32], strides = [1, 1]} : vector<32x32xf32> to vector<8x32xf32>
    %cst_100 = arith.constant dense<0.000000e+00> : vector<16x32xf32>
    %245 = tpu.matmul %243, %244, %cst_100 {dimension_numbers = #tpu.dot_dimension_numbers<[1], [0], [0], [1], [0, 0, 1, 1], [], []>} : vector<16x8xf32>, vector<8x32xf32>, vector<16x32xf32> -> vector<16x32xf32>
    %246 = arith.addf %224, %245 : vector<16x32xf32>
    %247 = vector.extract_strided_slice %177 {offsets = [0, 24], sizes = [16, 8], strides = [1, 1]} : vector<16x96xf32> to vector<16x8xf32>
    %248 = vector.extract_strided_slice %177 {offsets = [0, 56], sizes = [16, 8], strides = [1, 1]} : vector<16x96xf32> to vector<16x8xf32>
    %249 = vector.extract_strided_slice %177 {offsets = [0, 88], sizes = [16, 8], strides = [1, 1]} : vector<16x96xf32> to vector<16x8xf32>
    %250 = tpu.transpose %248, [1, 0] : vector<16x8xf32> -> vector<8x16xf32>
    %cst_101 = arith.constant dense<0.000000e+00> : vector<16x16xf32>
    %251 = tpu.matmul %247, %250, %cst_101 {dimension_numbers = #tpu.dot_dimension_numbers<[1], [0], [0], [1], [0, 0, 1, 1], [], []>} : vector<16x8xf32>, vector<8x16xf32>, vector<16x16xf32> -> vector<16x16xf32>
    %cst_102 = arith.constant 0.353553385 : f32
    %252 = vector.broadcast %cst_102 : f32 to vector<16x16xf32>
    %253 = arith.mulf %251, %252 : vector<16x16xf32>
    %254 = arith.addf %253, %10 : vector<16x16xf32>
    %cst_103 = arith.constant dense<0xFF800000> : vector<16xf32>
    %255 = vector.multi_reduction <maximumf>, %254, %cst_103 [1] : vector<16x16xf32> to vector<16xf32>
    %256 = vector.shape_cast %255 : vector<16xf32> to vector<16x1xf32>
    %257 = vector.broadcast %256 : vector<16x1xf32> to vector<16x16xf32>
    %258 = arith.subf %254, %257 : vector<16x16xf32>
    %259 = math.exp %258 : vector<16x16xf32>
    %cst_104 = arith.constant dense<0.000000e+00> : vector<16xf32>
    %260 = vector.multi_reduction <add>, %259, %cst_104 [1] : vector<16x16xf32> to vector<16xf32>
    %261 = vector.shape_cast %260 : vector<16xf32> to vector<16x1xf32>
    %262 = tpu.reciprocal %261 : vector<16x1xf32> -> vector<16x1xf32>
    %263 = vector.broadcast %262 : vector<16x1xf32> to vector<16x16xf32>
    %264 = arith.mulf %259, %263 : vector<16x16xf32>
    %cst_105 = arith.constant dense<0.000000e+00> : vector<16x8xf32>
    %265 = tpu.matmul %264, %249, %cst_105 {dimension_numbers = #tpu.dot_dimension_numbers<[1], [0], [0], [1], [0, 0, 1, 1], [], []>} : vector<16x16xf32>, vector<16x8xf32>, vector<16x8xf32> -> vector<16x8xf32>
    %266 = vector.extract_strided_slice %179 {offsets = [24, 0], sizes = [8, 32], strides = [1, 1]} : vector<32x32xf32> to vector<8x32xf32>
    %cst_106 = arith.constant dense<0.000000e+00> : vector<16x32xf32>
    %267 = tpu.matmul %265, %266, %cst_106 {dimension_numbers = #tpu.dot_dimension_numbers<[1], [0], [0], [1], [0, 0, 1, 1], [], []>} : vector<16x8xf32>, vector<8x32xf32>, vector<16x32xf32> -> vector<16x32xf32>
    %268 = arith.addf %246, %267 : vector<16x32xf32>
    %269 = arith.addf %174, %268 : vector<16x32xf32>
    %c1_107 = arith.constant 1 : index
    %c0_108 = arith.constant 0 : index
    %c0_109 = arith.constant 0 : index
    %270 = vector.load %arg10[%c1_107, %c0_108, %c0_109] : memref<2x1x32xf32, #tpu.memory_space<vmem>>, vector<1x1x32xf32>
    %271 = vector.shape_cast %270 : vector<1x1x32xf32> to vector<1x32xf32>
    %c1_110 = arith.constant 1 : index
    %c0_111 = arith.constant 0 : index
    %c0_112 = arith.constant 0 : index
    %272 = vector.load %arg11[%c1_110, %c0_111, %c0_112] : memref<2x1x32xf32, #tpu.memory_space<vmem>>, vector<1x1x32xf32>
    %273 = vector.shape_cast %272 : vector<1x1x32xf32> to vector<1x32xf32>
    %cst_113 = arith.constant dense<0.000000e+00> : vector<16xf32>
    %274 = vector.multi_reduction <add>, %269, %cst_113 [1] : vector<16x32xf32> to vector<16xf32>
    %275 = vector.shape_cast %274 : vector<16xf32> to vector<16x1xf32>
    %cst_114 = arith.constant 3.200000e+01 : f32
    %276 = vector.broadcast %cst_114 : f32 to vector<16x1xf32>
    %277 = arith.divf %275, %276 : vector<16x1xf32>
    %278 = vector.broadcast %277 : vector<16x1xf32> to vector<16x32xf32>
    %279 = arith.subf %269, %278 : vector<16x32xf32>
    %280 = arith.mulf %279, %279 : vector<16x32xf32>
    %cst_115 = arith.constant dense<0.000000e+00> : vector<16xf32>
    %281 = vector.multi_reduction <add>, %280, %cst_115 [1] : vector<16x32xf32> to vector<16xf32>
    %282 = vector.shape_cast %281 : vector<16xf32> to vector<16x1xf32>
    %cst_116 = arith.constant 3.200000e+01 : f32
    %283 = vector.broadcast %cst_116 : f32 to vector<16x1xf32>
    %284 = arith.divf %282, %283 : vector<16x1xf32>
    %285 = vector.broadcast %277 : vector<16x1xf32> to vector<16x32xf32>
    %286 = arith.subf %269, %285 : vector<16x32xf32>
    %cst_117 = arith.constant 9.99999974E-6 : f32
    %287 = vector.broadcast %cst_117 : f32 to vector<16x1xf32>
    %288 = arith.addf %284, %287 : vector<16x1xf32>
    %289 = math.rsqrt %288 : vector<16x1xf32>
    %290 = vector.broadcast %289 : vector<16x1xf32> to vector<16x32xf32>
    %291 = arith.mulf %286, %290 : vector<16x32xf32>
    %292 = vector.broadcast %271 : vector<1x32xf32> to vector<16x32xf32>
    %293 = arith.mulf %291, %292 : vector<16x32xf32>
    %294 = vector.broadcast %273 : vector<1x32xf32> to vector<16x32xf32>
    %295 = arith.addf %293, %294 : vector<16x32xf32>
    %c1_118 = arith.constant 1 : index
    %c0_119 = arith.constant 0 : index
    %c0_120 = arith.constant 0 : index
    %296 = vector.load %arg6[%c1_118, %c0_119, %c0_120] : memref<2x32x64xf32, #tpu.memory_space<vmem>>, vector<1x32x64xf32>
    %297 = vector.shape_cast %296 : vector<1x32x64xf32> to vector<32x64xf32>
    %cst_121 = arith.constant dense<0.000000e+00> : vector<16x64xf32>
    %298 = tpu.matmul %295, %297, %cst_121 {dimension_numbers = #tpu.dot_dimension_numbers<[1], [0], [0], [1], [0, 0, 1, 1], [], []>} : vector<16x32xf32>, vector<32x64xf32>, vector<16x64xf32> -> vector<16x64xf32>
    %c1_122 = arith.constant 1 : index
    %c0_123 = arith.constant 0 : index
    %c0_124 = arith.constant 0 : index
    %299 = vector.load %arg7[%c1_122, %c0_123, %c0_124] : memref<2x1x64xf32, #tpu.memory_space<vmem>>, vector<1x1x64xf32>
    %300 = vector.shape_cast %299 : vector<1x1x64xf32> to vector<1x64xf32>
    %301 = vector.broadcast %300 : vector<1x64xf32> to vector<16x64xf32>
    %302 = arith.addf %298, %301 : vector<16x64xf32>
    %cst_125 = arith.constant 0.000000e+00 : f32
    %303 = vector.broadcast %cst_125 : f32 to vector<16x64xf32>
    %304 = arith.maximumf %302, %303 : vector<16x64xf32>
    %c1_126 = arith.constant 1 : index
    %c0_127 = arith.constant 0 : index
    %c0_128 = arith.constant 0 : index
    %305 = vector.load %arg8[%c1_126, %c0_127, %c0_128] : memref<2x64x32xf32, #tpu.memory_space<vmem>>, vector<1x64x32xf32>
    %306 = vector.shape_cast %305 : vector<1x64x32xf32> to vector<64x32xf32>
    %cst_129 = arith.constant dense<0.000000e+00> : vector<16x32xf32>
    %307 = tpu.matmul %304, %306, %cst_129 {dimension_numbers = #tpu.dot_dimension_numbers<[1], [0], [0], [1], [0, 0, 1, 1], [], []>} : vector<16x64xf32>, vector<64x32xf32>, vector<16x32xf32> -> vector<16x32xf32>
    %c1_130 = arith.constant 1 : index
    %c0_131 = arith.constant 0 : index
    %c0_132 = arith.constant 0 : index
    %308 = vector.load %arg9[%c1_130, %c0_131, %c0_132] : memref<2x1x32xf32, #tpu.memory_space<vmem>>, vector<1x1x32xf32>
    %309 = vector.shape_cast %308 : vector<1x1x32xf32> to vector<1x32xf32>
    %310 = vector.broadcast %309 : vector<1x32xf32> to vector<16x32xf32>
    %311 = arith.addf %307, %310 : vector<16x32xf32>
    %312 = arith.addf %295, %311 : vector<16x32xf32>
    %c1_133 = arith.constant 1 : index
    %c0_134 = arith.constant 0 : index
    %c0_135 = arith.constant 0 : index
    %313 = vector.load %arg12[%c1_133, %c0_134, %c0_135] : memref<2x1x32xf32, #tpu.memory_space<vmem>>, vector<1x1x32xf32>
    %314 = vector.shape_cast %313 : vector<1x1x32xf32> to vector<1x32xf32>
    %c1_136 = arith.constant 1 : index
    %c0_137 = arith.constant 0 : index
    %c0_138 = arith.constant 0 : index
    %315 = vector.load %arg13[%c1_136, %c0_137, %c0_138] : memref<2x1x32xf32, #tpu.memory_space<vmem>>, vector<1x1x32xf32>
    %316 = vector.shape_cast %315 : vector<1x1x32xf32> to vector<1x32xf32>
    %cst_139 = arith.constant dense<0.000000e+00> : vector<16xf32>
    %317 = vector.multi_reduction <add>, %312, %cst_139 [1] : vector<16x32xf32> to vector<16xf32>
    %318 = vector.shape_cast %317 : vector<16xf32> to vector<16x1xf32>
    %cst_140 = arith.constant 3.200000e+01 : f32
    %319 = vector.broadcast %cst_140 : f32 to vector<16x1xf32>
    %320 = arith.divf %318, %319 : vector<16x1xf32>
    %321 = vector.broadcast %320 : vector<16x1xf32> to vector<16x32xf32>
    %322 = arith.subf %312, %321 : vector<16x32xf32>
    %323 = arith.mulf %322, %322 : vector<16x32xf32>
    %cst_141 = arith.constant dense<0.000000e+00> : vector<16xf32>
    %324 = vector.multi_reduction <add>, %323, %cst_141 [1] : vector<16x32xf32> to vector<16xf32>
    %325 = vector.shape_cast %324 : vector<16xf32> to vector<16x1xf32>
    %cst_142 = arith.constant 3.200000e+01 : f32
    %326 = vector.broadcast %cst_142 : f32 to vector<16x1xf32>
    %327 = arith.divf %325, %326 : vector<16x1xf32>
    %328 = vector.broadcast %320 : vector<16x1xf32> to vector<16x32xf32>
    %329 = arith.subf %312, %328 : vector<16x32xf32>
    %cst_143 = arith.constant 9.99999974E-6 : f32
    %330 = vector.broadcast %cst_143 : f32 to vector<16x1xf32>
    %331 = arith.addf %327, %330 : vector<16x1xf32>
    %332 = math.rsqrt %331 : vector<16x1xf32>
    %333 = vector.broadcast %332 : vector<16x1xf32> to vector<16x32xf32>
    %334 = arith.mulf %329, %333 : vector<16x32xf32>
    %335 = vector.broadcast %314 : vector<1x32xf32> to vector<16x32xf32>
    %336 = arith.mulf %334, %335 : vector<16x32xf32>
    %337 = vector.broadcast %316 : vector<1x32xf32> to vector<16x32xf32>
    %338 = arith.addf %336, %337 : vector<16x32xf32>
    %c0_144 = arith.constant 0 : index
    %c0_145 = arith.constant 0 : index
    %339 = vector.load %arg14[%c0_144, %c0_145] : memref<16x32xf32, #tpu.memory_space<vmem>>, vector<16x32xf32>
    tpu.vector_store %arg14[%c0_144, %c0_145], %338 {strides = array<i32>} : memref<16x32xf32, #tpu.memory_space<vmem>>, vector<16x32xf32>,
    return
  }
}

</mosaic_0001>

<bundles_post_ra>
// kernel: tpu_custom_call.1
= control target key start
LH: loop header
LB: loop body
LE: loop exit
PB: predicated region body
PF: predicated region fallthrough
CT: control target
= control target key end

     0   :  { %19 = vsyncpa [#allocation3], 0  ;;  %s4732_s0 = inlined_call_operand.vmem [shape: s32[16,1], index: 0, kind: input, shape index: {}]   ;;  %s4733_s1 = inlined_call_operand.hbm [shape: f32[32,32], index: 1, kind: input, shape index: {}]   ;;  %s4734_s2 = inlined_call_operand.vmem [shape: f32[16,32], index: 2, kind: input, shape index: {}]   ;;  %s4735_s3 = inlined_call_operand.hbm [shape: f32[16,16], index: 3, kind: input, shape index: {}]   ;;  %s4736_s4 = inlined_call_operand.vmem [shape: f32[2,32,96], index: 4, kind: input, shape index: {}]   ;;  %s4737_s5 = inlined_call_operand.vmem [shape: f32[2,32,32], index: 5, kind: input, shape index: {}]   ;;  %s4738_s6 = inlined_call_operand.vmem [shape: f32[2,32,64], index: 6, kind: input, shape index: {}]   ;;  %s4739_s7 = inlined_call_operand.vmem [shape: f32[2,1,64], index: 7, kind: input, shape index: {}]   ;;  %s4740_s8 = inlined_call_operand.vmem [shape: f32[2,64,32], index: 8, kind: input, shape index: {}]   ;;  %s4741_s9 = inlined_call_operand.vmem [shape: f32[2,1,32], index: 9, kind: input, shape index: {}]   ;;  %s4742_s10 = inlined_call_operand.vmem [shape: f32[2,1,32], index: 10, kind: input, shape index: {}]   ;;  %s4743_s11 = inlined_call_operand.vmem [shape: f32[2,1,32], index: 11, kind: input, shape index: {}]   ;;  %s4744_s12 = inlined_call_operand.vmem [shape: f32[2,1,32], index: 12, kind: input, shape index: {}]   ;;  %s4745_s13 = inlined_call_operand.vmem [shape: f32[2,1,32], index: 13, kind: input, shape index: {}]   ;;  %s4746_s14 = inlined_call_operand.hbm [shape: f32[16,32], index: 14, kind: output, shape index: {}]  }
   0x1   :  { %20 = vsyncpa [#allocation6], 0 }
   0x2   :  { %21 = vsyncpa [#allocation4], 0  ;;  %s4160_s29 = smov [#allocation2]   ;;  %s4088_s17 = scalar_lea.hbm %s4733_s1, 512 }
   0x3   :  { %s29_s30 = sshll.u32 %s4160_s29, 4  ;;  %p4089_p0 = scmp.ne.s32.totalorder %s4733_s1, %s4088_s17  ;;  %s30_s30 = int_to_ptr.vmem [resolvable:$true] %s29_s30 }
   0x4   :  { %p4092_p1 = scmp.lt.u32.totalorder %s4088_s17, %s4733_s1 }
   0x6   :  { %p4094_p2 = pnand %p4092_p1, %p4089_p0 }
   0x8   :  { %4097 = shalt.err (!%p4094_p2)
}
   0x9   :  { %s4098_s22 = scalar_lea.vmem %s30_s30, 512  ;;  %p4103_p4 = scmp.lt.s32.totalorder %s30_s30, %s30_s30 }
   0xa   :  { %p4099_p3 = scmp.ne.s32.totalorder %s30_s30, %s4098_s22  ;;  %p4104_p5 = scmp.lt.s32.totalorder %s4098_s22, %s4098_s22 }
   0xc   :  { %p4105_p6 = por %p4104_p5, %p4103_p4 }
   0xe   :  { %p4106_p7 = pnand %p4105_p6, %p4099_p3 }
  0x10   :  { %4109 = shalt.err (!%p4106_p7)
}
  0x11   :  { %s4747_s23 = smov 128   ;;  %s4748_s24 = smov 8  }
  0x12   :  { %35 = dma.hbm_to_vmem [thread:$0]  %s4733_s1, 512, %s30_s30, [#allocation3], %s4747_s23, %s4747_s23, %s4748_s24  }
  0x13   :  { %s4163_s27 = smov [#allocation5]   ;;  %s4110_s16 = scalar_lea.hbm %s4735_s3, 256 }
  0x14   :  { %s43_s28 = sshll.u32 %s4163_s27, 4  ;;  %p4111_p8 = scmp.ne.s32.totalorder %s4735_s3, %s4110_s16  ;;  %s44_s28 = int_to_ptr.vmem [resolvable:$true] %s43_s28 }
  0x15   :  { %p4114_p9 = scmp.lt.u32.totalorder %s4110_s16, %s4735_s3 }
  0x17   :  { %p4116_p10 = pnand %p4114_p9, %p4111_p8 }
  0x19   :  { %4119 = shalt.err (!%p4116_p10)
}
  0x1a   :  { %s4120_s21 = scalar_lea.vmem %s44_s28, 256  ;;  %p4125_p12 = scmp.lt.s32.totalorder %s44_s28, %s44_s28 }
  0x1b   :  { %p4121_p11 = scmp.ne.s32.totalorder %s44_s28, %s4120_s21  ;;  %p4126_p13 = scmp.lt.s32.totalorder %s4120_s21, %s4120_s21 }
  0x1d   :  { %p4127_p0 = por %p4126_p13, %p4125_p12 }
  0x1f   :  { %p4128_p1 = pnand %p4127_p0, %p4121_p11 }
  0x21   :  { %4131 = shalt.err (!%p4128_p1)
}
  0x22   :  { %49 = dma.hbm_to_vmem [thread:$0]  %s4735_s3, 256, %s44_s28, [#allocation6], %s4747_s23, %s4747_s23, %s4748_s24  }
  0x23   :  { %4154 = dma.done.wait [#allocation3], 512  }
  0x24   :  { %4155 = vsyncadd [#allocation3], 4294966784 }
  0x25   :  { %4156 = dma.done.wait [#allocation6], 256  }
  0x26   :  { %4157 = vsyncadd [#allocation6], 4294967040  ;;  %v4164_v0 = vmov 0   ;;  %v76_v1 = vld [vmem:[%s4732_s0] sm:$0xff]  ;;  %v92_v2 = vld [vmem:[#allocation2] sm:$0xff]  ;;  %v78_v12 = vlaneseq  ;;  %vm98_vm0 = vcmask 261120  }
  0x27   :  { %3925 = vset.pattern.permute.xlu0 %v4164_v0  ;;  %v93_v3 = vld [vmem:[#allocation2 + $0x8] sm:$0xff]  ;;  %v94_v4 = vld [vmem:[#allocation2 + $0x10] sm:$0xff]  ;;  %v95_v5 = vld [vmem:[#allocation2 + $0x18] sm:$0xff]  ;;  %v4165_v15 = vmov 0.0   ;;  %vm277_vm3 = vcmask 64512   ;;  %vm365_vm5 = vcmask 130048  }
  0x28   :  { %81 = vperm.xlu0 %3925, %v76_v1   ;;  %v77_v6 = vld [vmem:[%s4732_s0 + $0x8] sm:$0xff]  ;;  %v3743_v7 = vpack.c.bf16 %v93_v3, %v92_v2  ;;  %v3747_v8 = vpack.c.bf16 %v95_v5, %v94_v4  ;;  %v182_v9 = vld [vmem:[%s4736_s4] sm:$0xff]  ;;  %v79_v13 = vand.u32 127, %v78_v12  ;;  %v184_v19 = vld [vmem:[%s4736_s4 + $0x10] sm:$0xff]  ;;  %s4167_s30 = smov 88   ;;  %s4168_s22 = smov 120  }
  0x29   :  { %v183_v10 = vld [vmem:[%s4736_s4 + $0x8] sm:$0xff]  ;;  %v185_v20 = vld [vmem:[%s4736_s4 + $0x18] sm:$0xff]  ;;  %v96_v22 = vld [vmem:[%s4734_s2] sm:$0xff]  ;;  %s4169_s25 = smov 64   ;;  %s4170_s26 = smov 80   ;;  %vm1571_vm6 = vcmask 523264  }
  0x2a   :  { %3744 = vmatprep.subr.bf16.mxu1 %v3743_v7  ;;  %v3751_v11 = vpack.c.bf16 %v183_v10, %v182_v9  ;;  %v3755_v21 = vpack.c.bf16 %v185_v20, %v184_v19  ;;  %v97_v23 = vld [vmem:[%s4734_s2 + $0x8] sm:$0xff]  ;;  %s4166_s2 = smov 96   ;;  %vm4331_vm4 = vmpackc.low %vm277_vm3, %vm277_vm3  ;;  %v4341_v37 = vld [vmem:[#allocation5 + $0x8] sm:$0xff]  ;;  %s4171_s27 = smov 112  }
  0x2b   :  { %3746 = vmatpush3.bf16.msra.mxu1 %v3743_v7  ;;  %v4343_v40 = vld [vmem:[#allocation5] sm:$0xff]  ;;  %s4172_s3 = smov 56   ;;  %s4173_s28 = smov 104  }
  0x2c   :  { %84 = vperm.xlu0 %3925, %v77_v6   ;;  %3748 = vmatprep.subr.bf16.mxu1 %v3747_v8  ;;  %s4174_s29 = smov 48   ;;  %s4749_s15 = smov 40  }
  0x2d   :  { %s4176_s0 = smov 72   ;;  %s4177_s18 = smov [#allocation7]  }
  0x2e   :  { %s3229_s24 = sshll.u32 %s4177_s18, 4  ;;  %s3230_s24 = int_to_ptr.vmem [resolvable:$true] %s3229_s24 }
  0x2f   :  { %3750 = vmatpush3.bf16.msra.mxu1 %v3747_v8  ;;  %p4137_p3 = scmp.lt.s32.totalorder %s3230_s24, %s3230_s24 }
  0x30   :  { %3752 = vmatprep.subr.bf16.mxu1 %v3751_v11 }
  0xa7   :  { %v82_v14 = vpop.permute.xlu0 %81 }
  0xa8   :  { %vm86_vm1 = vcmp.eq.s32.totalorder %v82_v14, %v79_v13 }
  0xa9   :  { %v3242_v16 = vsel %vm86_vm1, 1.0, %v4165_v15 }
  0xaa   :  { %3506 = vmatprep.mubr.msk.f32.mxu1 %vm98_vm0, %v3242_v16 }
  0xab   :  { %v85_v17 = vpop.permute.xlu0 %84 }
  0xac   :  { %vm87_vm2 = vcmp.eq.s32.totalorder %v85_v17, %v79_v13 }
  0xad   :  { %v3243_v18 = vsel %vm87_vm2, 1.0, %v4165_v15 }
  0xae   :  { %3507 = vmatmul.mubr.msk.f32.vlgmr.msra.gmra.mrb[0].mxu1 %vm98_vm0, %v3243_v18 }
  0xaf   :  { %3754 = vmatpush3.bf16.msra.mxu1 %v3751_v11 }
  0xb0   :  { %3756 = vmatprep.subr.bf16.mxu1 %v3755_v21 }
  0xb3   :  { %3758 = vmatpush3.bf16.msra.mxu1 %v3755_v21 }
 0x181   :  { %v3508_v24 = vpop.f32.mrb[0].mxu1 }
 0x182   :  { %v171_v25 = vpop.f32.mrb[1].mxu1  ;;  %v4311_v27 = vadd.f32 %v3508_v24, %v97_v23 }
 0x183   :  { %v4309_v26 = vadd.f32 %v171_v25, %v96_v22 }
 0x185   :  { %3517 = vmatprep.mubr.msk.f32.mxu1 %vm98_vm0, %v4309_v26 }
 0x186   :  { %3518 = vmatmul.mubr.msk.f32.vlgmr.msra.gmra.mrb[2].mxu1 %vm98_vm0, %v4311_v27 }
 0x259   :  { %v4317_v28 = vpop.f32.mrb[2].mxu1 }
 0x25a   :  { %v4319_v29 = vpop.f32.mrb[3].mxu1 }
 0x25b   :  { %3524 = vmatprep.mubr.msk.f32.mxu0 %vm277_vm3, %v4319_v29  ;;  %v4325_v30 = vpack.i.bf16 %v4317_v28, %v4319_v29 }
 0x25d   :  { %3927 = vrot.lane.b32.xlu1 %v4325_v30, %s4166_s2 }
 0x2cf   :  { %v3928_v31 = vpop.permute.xlu1 %3927 }
 0x2d0   :  { %v3930_v32 = vunpack.i.h.bf16 %v3928_v31  ;;  %v3929_v33 = vunpack.i.l.bf16 %v3928_v31 }
 0x2d2   :  { %v3759_v35 = vpack.c.bf16 %v3930_v32, %v3929_v33 }
 0x2d4   :  { %3761 = vmatprep.subr.msk.bf16.mxu0 %vm4331_vm4, %v3759_v35 }
 0x2d5   :  { %3764 = vmatpush3.bf16.xpose.msk.msra.mxu0 %vm4331_vm4, %v3759_v35 }
 0x2dc   :  { %3525 = vmatmul.mubr.msk.f32.vlgmr.msra.gmra.mrb[0].mxu0 %vm277_vm3, %v4317_v28 }
 0x3af   :  { %v3526_v36 = vpop.f32.mrb[0].mxu0 }
 0x3b0   :  { %v362_v38 = vmul.f32 0.35355338, %v3526_v36  ;;  %v352_v39 = vpop.f32.mrb[1].mxu0 }
 0x3b1   :  { %v361_v41 = vmul.f32 0.35355338, %v352_v39 }
 0x3b2   :  { %v364_v42 = vadd.f32 %v362_v38, %v4341_v37 }
 0x3b3   :  { %v363_v43 = vadd.f32 %v361_v41, %v4343_v40 }
 0x3b4   :  { %v369_v44 = vsel %vm365_vm5, %v364_v42, -inf }
 0x3b5   :  { %370 = vmax.xlane.f32.xlu0 %v369_v44  ;;  %v366_v45 = vsel %vm365_vm5, %v363_v43, -inf }
 0x3b6   :  { %367 = vmax.xlane.f32.xlu1 %v366_v45 }
 0x442   :  { %v371_v46 = vpop.xlane.xlu0 %370 }
 0x443   :  { %v373_v47 = vsub.f32 %v364_v42, %v371_v46  ;;  %v368_v48 = vpop.xlane.xlu1 %367 }
 0x444   :  { %v372_v49 = vsub.f32 %v363_v43, %v368_v48 }
 0x445   :  { %v376_v50 = vmul.f32 1.442695, %v373_v47 }
 0x446   :  { %v374_v51 = vmul.f32 1.442695, %v372_v49 }
 0x447   :  { %4006 = vpow2.f32 %v376_v50 }
 0x448   :  { %4008 = vpow2.f32 %v374_v51 }
 0x451   :  { %v4007_v52 = vpop.eup %4006 }
 0x452   :  { %v4009_v53 = vpop.eup %4008  ;;  %v381_v54 = vsel %vm365_vm5, %v4007_v52, 0.0 }
 0x453   :  { %382 = vadd.xlane.f32.xlu1 %v381_v54  ;;  %v378_v55 = vsel %vm365_vm5, %v4009_v53, 0.0 }
 0x454   :  { %379 = vadd.xlane.f32.xlu0 %v378_v55 }
 0x464   :  { %3937 = vrot.lane.b32.xlu1 %v4325_v30, %s4167_s30 }
 0x468   :  { %475 = vrot.lane.b32.xlu1 %v4319_v29, %s4168_s22 }
 0x46a   :  { %3932 = vrot.lane.b32.xlu0 %v4325_v30, %s4169_s25 }
 0x46c   :  { %3942 = vrot.lane.b32.xlu1 %v4325_v30, %s4170_s26 }
 0x46e   :  { %477 = vrot.lane.b32.xlu0 %v4317_v28, %s4168_s22 }
 0x470   :  { %843 = vrot.lane.b32.xlu1 %v4317_v28, %s4171_s27 }
 0x472   :  { %841 = vrot.lane.b32.xlu0 %v4319_v29, %s4171_s27 }
 0x4e0   :  { %v383_v56 = vpop.xlane.xlu1 %382 }
 0x4e1   :  { %4010 = vrcp.f32 %v383_v56  ;;  %v380_v57 = vpop.xlane.xlu0 %379 }
 0x4e2   :  { %4012 = vrcp.f32 %v380_v57 }
 0x4e4   :  { %v3938_v58 = vpop.permute.xlu1 %3937 }
 0x4e5   :  { %v3933_v59 = vpop.permute.xlu0 %3932  ;;  %v3940_v60 = vunpack.i.h.bf16 %v3938_v58  ;;  %v3939_v61 = vunpack.i.l.bf16 %v3938_v58 }
 0x4e6   :  { %v3935_v62 = vunpack.i.h.bf16 %v3933_v59  ;;  %v3934_v63 = vunpack.i.l.bf16 %v3933_v59 }
 0x4e7   :  { %v3769_v2 = vpack.c.bf16 %v3940_v60, %v3939_v61 }
 0x4e8   :  { %v3765_v0 = vpack.c.bf16 %v3935_v62, %v3934_v63  ;;  %v476_v1 = vpop.permute.xlu1 %475 }
 0x4e9   :  { %v478_v11 = vpop.permute.xlu0 %477 }
 0x4ea   :  { %3766 = vmatprep.subr.bf16.mxu1 %v3765_v0 }
 0x4eb   :  { %v4011_v3 = vpop.eup %4010  ;;  %3768 = vmatpush3.bf16.msra.mxu1 %v3765_v0 }
 0x4ec   :  { %v4013_v4 = vpop.eup %4012  ;;  %v3943_v5 = vpop.permute.xlu1 %3942  ;;  %3771 = vmatprep.subr.msk.bf16.mxu1 %vm4331_vm4, %v3769_v2  ;;  %v387_v7 = vmul.f32 %v4011_v3, %v4007_v52 }
 0x4ed   :  { %v386_v6 = vmul.f32 %v4013_v4, %v4009_v53  ;;  %v3945_v8 = vunpack.i.h.bf16 %v3943_v5  ;;  %v3944_v9 = vunpack.i.l.bf16 %v3943_v5  ;;  %v842_v12 = vpop.permute.xlu0 %841 }
 0x4ef   :  { %3531 = vmatprep.mubr.msk.f32.mxu1 %vm365_vm5, %v386_v6  ;;  %v3779_v10 = vpack.c.bf16 %v3945_v8, %v3944_v9  ;;  %v268_v9 = vld [vmem:[%s4737_s5 + $0x8] sm:$0xff] }
 0x4f0   :  { %3532 = vmatmul.mubr.msk.f32.vlgmr.msra.gmra.mrb[4].mxu1 %vm365_vm5, %v387_v7  ;;  %v844_v13 = vpop.permute.xlu1 %843 }
 0x4f1   :  { %3538 = vmatprep.mubr.msk.f32.mxu1 %vm277_vm3, %v476_v1 }
 0x4f4   :  { %3774 = vmatpush3.bf16.xpose.msk.msra.mxu1 %vm4331_vm4, %v3769_v2 }
 0x4f5   :  { %3781 = vmatprep.subr.msk.bf16.mxu1 %vm4331_vm4, %v3779_v10 }
 0x4fb   :  { %3539 = vmatmul.mubr.msk.f32.vlgmr.msra.gmra.mrb[6].mxu1 %vm277_vm3, %v478_v11 }
 0x4fc   :  { %3784 = vmatpush3.bf16.xpose.msk.msra.mxu1 %vm4331_vm4, %v3779_v10  ;;  %3562 = vmatprep.mubr.msk.f32.mxu1 %vm277_vm3, %v842_v12  ;;  %v267_v10 = vld [vmem:[%s4737_s5] sm:$0xff] }
 0x503   :  { %3563 = vmatmul.mubr.msk.f32.vlgmr.msra.gmra.mrb[8].mxu1 %vm277_vm3, %v844_v13 }
 0x5c3   :  { %v4379_v14 = vpop.f32.mrb[4].mxu1 }
 0x5c4   :  { %v4381_v15 = vpop.f32.mrb[5].mxu1 }
 0x5ce   :  { %v3540_v16 = vpop.f32.mrb[6].mxu1 }
 0x5cf   :  { %v567_v17 = vmul.f32 0.35355338, %v3540_v16  ;;  %v557_v18 = vpop.f32.mrb[7].mxu1 }
 0x5d0   :  { %v566_v19 = vmul.f32 0.35355338, %v557_v18 }
 0x5d1   :  { %v569_v20 = vadd.f32 %v567_v17, %v4341_v37 }
 0x5d2   :  { %v568_v21 = vadd.f32 %v566_v19, %v4343_v40 }
 0x5d3   :  { %v573_v22 = vsel %vm365_vm5, %v569_v20, -inf }
 0x5d4   :  { %574 = vmax.xlane.f32.xlu1 %v573_v22  ;;  %v570_v23 = vsel %vm365_vm5, %v568_v21, -inf }
 0x5d5   :  { %571 = vmax.xlane.f32.xlu0 %v570_v23 }
 0x5d6   :  { %v3564_v24 = vpop.f32.mrb[8].mxu1 }
 0x5d7   :  { %v923_v25 = vpop.f32.mrb[9].mxu1  ;;  %v933_v31 = vmul.f32 0.35355338, %v3564_v24 }
 0x5d8   :  { %v932_v50 = vmul.f32 0.35355338, %v923_v25 }
 0x5d9   :  { %v935_v32 = vadd.f32 %v933_v31, %v4341_v37 }
 0x5da   :  { %v934_v51 = vadd.f32 %v932_v50, %v4343_v40 }
 0x5db   :  { %v939_v33 = vsel %vm365_vm5, %v935_v32, -inf }
 0x5dc   :  { %v936_v52 = vsel %vm365_vm5, %v934_v51, -inf }
 0x5e5   :  { %3947 = vrot.lane.b32.xlu1 %v4325_v30, %s4172_s3 }
 0x5e9   :  { %1128 = vrot.lane.b32.xlu1 %v4319_v29, %s4173_s28 }
 0x5ed   :  { %1130 = vrot.lane.b32.xlu1 %v4317_v28, %s4173_s28 }
 0x611   :  { %940 = vmax.xlane.f32.xlu1 %v939_v33 }
 0x622   :  { %3957 = vrot.lane.b32.xlu1 %v4325_v30, %s4174_s29 }
 0x626   :  { %3962 = vrot.lane.b32.xlu1 %v4325_v30, %s4749_s15  ;;  %s4132_s15 = scalar_lea.vmem %s3230_s24, 256 }
 0x627   :  { %p4133_p2 = scmp.ne.s32.totalorder %s3230_s24, %s4132_s15  ;;  %p4138_p4 = scmp.lt.s32.totalorder %s4132_s15, %s4132_s15 }
 0x629   :  { %p4139_p5 = por %p4138_p4, %p4137_p3 }
 0x62b   :  { %p4140_p6 = pnand %p4139_p5, %p4133_p2 }
 0x661   :  { %v575_v35 = vpop.xlane.xlu1 %574 }
 0x662   :  { %v577_v36 = vsub.f32 %v569_v20, %v575_v35  ;;  %v572_v29 = vpop.xlane.xlu0 %571 }
 0x663   :  { %v576_v38 = vsub.f32 %v568_v21, %v572_v29 }
 0x664   :  { %v580_v39 = vmul.f32 1.442695, %v577_v36 }
 0x665   :  { %v578_v28 = vmul.f32 1.442695, %v576_v38  ;;  %v3948_v41 = vpop.permute.xlu1 %3947  ;;  %v269_v38 = vld [vmem:[%s4737_s5 + $0x10] sm:$0xff] }
 0x666   :  { %v3950_v42 = vunpack.i.h.bf16 %v3948_v41  ;;  %v3949_v43 = vunpack.i.l.bf16 %v3948_v41 }
 0x667   :  { %4014 = vpow2.f32 %v578_v28 }
 0x668   :  { %v3775_v44 = vpack.c.bf16 %v3950_v42, %v3949_v43  ;;  %4016 = vpow2.f32 %v580_v39 }
 0x669   :  { %v1129_v45 = vpop.permute.xlu1 %1128 }
 0x66a   :  { %3776 = vmatprep.subr.bf16.mxu0 %v3775_v44  ;;  %3581 = vmatprep.mubr.msk.f32.mxu1 %vm277_vm3, %v1129_v45 }
 0x66b   :  { %3778 = vmatpush3.bf16.msra.mxu0 %v3775_v44 }
 0x66c   :  { %3548 = vmatprep.subr.mxu0 %v268_v9 }
 0x66d   :  { %v1131_v62 = vpop.permute.xlu1 %1130 }
 0x671   :  { %v4015_v46 = vpop.eup %4014 }
 0x672   :  { %v582_v47 = vsel %vm365_vm5, %v4015_v46, 0.0  ;;  %v4017_v48 = vpop.eup %4016 }
 0x673   :  { %583 = vadd.xlane.f32.xlu0 %v582_v47  ;;  %v585_v49 = vsel %vm365_vm5, %v4017_v48, 0.0 }
 0x677   :  { %586 = vadd.xlane.f32.xlu0 %v585_v49 }
 0x68d   :  { %3952 = vrot.lane.b32.xlu0 %v4325_v30, %s4176_s0 }
 0x69e   :  { %v941_v63 = vpop.xlane.xlu1 %940 }
 0x69f   :  { %v943_v0 = vsub.f32 %v935_v32, %v941_v63 }
 0x6a1   :  { %v946_v3 = vmul.f32 1.442695, %v943_v0 }
 0x6a2   :  { %v3958_v12 = vpop.permute.xlu1 %3957 }
 0x6a3   :  { %v3960_v16 = vunpack.i.h.bf16 %v3958_v12  ;;  %v3959_v17 = vunpack.i.l.bf16 %v3958_v12 }
 0x6a5   :  { %v3785_v20 = vpack.c.bf16 %v3960_v16, %v3959_v17  ;;  %v1464_v17 = vld [vmem:[%s4738_s6 + $0x10] sm:$0xff] }
 0x6a6   :  { %v3963_v32 = vpop.permute.xlu1 %3962 }
 0x6a7   :  { %v3964_v39 = vunpack.i.l.bf16 %v3963_v32 }
 0x6ac   :  { %937 = vmax.xlane.f32.xlu0 %v936_v52 }
 0x700   :  { %v584_v53 = vpop.xlane.xlu0 %583 }
 0x701   :  { %4018 = vrcp.f32 %v584_v53 }
 0x704   :  { %v587_v54 = vpop.xlane.xlu0 %586 }
 0x705   :  { %4020 = vrcp.f32 %v587_v54  ;;  %v270_v54 = vld [vmem:[%s4737_s5 + $0x18] sm:$0xff] }
 0x708   :  { %v3953_v55 = vpop.permute.xlu0 %3952 }
 0x709   :  { %v3955_v56 = vunpack.i.h.bf16 %v3953_v55  ;;  %v3954_v57 = vunpack.i.l.bf16 %v3953_v55 }
 0x70b   :  { %v4019_v58 = vpop.eup %4018  ;;  %v3789_v59 = vpack.c.bf16 %v3955_v56, %v3954_v57 }
 0x70c   :  { %v590_v60 = vmul.f32 %v4019_v58, %v4015_v46 }
 0x70d   :  { %3791 = vmatprep.subr.msk.bf16.mxu1 %vm4331_vm4, %v3789_v59 }
 0x70e   :  { %3545 = vmatprep.mubr.msk.f32.mxu0 %vm365_vm5, %v590_v60  ;;  %3794 = vmatpush3.bf16.xpose.msk.msra.mxu1 %vm4331_vm4, %v3789_v59 }
 0x70f   :  { %v4021_v30 = vpop.eup %4020 }
 0x710   :  { %v591_v61 = vmul.f32 %v4021_v30, %v4017_v48 }
 0x712   :  { %3546 = vmatmul.mubr.msk.f32.vlgmr.msra.gmra.mrb[2].mxu0 %vm365_vm5, %v591_v61 }
 0x713   :  { %3549 = vmatpush3.msra.mxu0 %v268_v9 }
 0x714   :  { %3553 = vmatprep.subr.mxu0 %v267_v10 }
 0x715   :  { %3582 = vmatmul.mubr.msk.f32.vlgmr.msra.gmra.mrb[10].mxu1 %vm277_vm3, %v1131_v62 }
 0x739   :  { %v938_v1 = vpop.xlane.xlu0 %937 }
 0x73a   :  { %v942_v2 = vsub.f32 %v934_v51, %v938_v1 }
 0x73c   :  { %v944_v4 = vmul.f32 1.442695, %v942_v2 }
 0x73e   :  { %4022 = vpow2.f32 %v944_v4 }
 0x73f   :  { %4024 = vpow2.f32 %v946_v3 }
 0x748   :  { %v4023_v5 = vpop.eup %4022 }
 0x749   :  { %v948_v6 = vsel %vm365_vm5, %v4023_v5, 0.0  ;;  %v4025_v7 = vpop.eup %4024 }
 0x74a   :  { %949 = vadd.xlane.f32.xlu0 %v948_v6  ;;  %v951_v8 = vsel %vm365_vm5, %v4025_v7, 0.0 }
 0x74e   :  { %952 = vadd.xlane.f32.xlu0 %v951_v8 }
 0x7d7   :  { %v950_v11 = vpop.xlane.xlu0 %949 }
 0x7d8   :  { %4026 = vrcp.f32 %v950_v11 }
 0x7db   :  { %v953_v13 = vpop.xlane.xlu0 %952 }
 0x7dc   :  { %4028 = vrcp.f32 %v953_v13  ;;  %v1463_v13 = vld [vmem:[%s4738_s6 + $0x8] sm:$0xff] }
 0x7e2   :  { %v4027_v25 = vpop.eup %4026 }
 0x7e3   :  { %v956_v29 = vmul.f32 %v4027_v25, %v4023_v5 }
 0x7e5   :  { %v3547_v18 = vpop.f32.mrb[2].mxu0 }
 0x7e6   :  { %v670_v19 = vpop.f32.mrb[3].mxu0  ;;  %v4029_v36 = vpop.eup %4028 }
 0x7e7   :  { %3550 = vmatprep.mubr.msk.f32.mxu0 %vm277_vm3, %v670_v19  ;;  %v957_v28 = vmul.f32 %v4029_v36, %v4025_v7 }
 0x7e8   :  { %3551 = vmatmul.mubr.msk.f32.vlgmr.msra.gmra.mrb[4].mxu0 %vm277_vm3, %v3547_v18  ;;  %v3583_v21 = vpop.f32.mrb[10].mxu1  ;;  %v1465_v18 = vld [vmem:[%s4738_s6 + $0x18] sm:$0xff] }
 0x7e9   :  { %3554 = vmatpush3.msra.mxu0 %v267_v10  ;;  %3555 = vmatprep.mubr.msk.f32.mxu0 %vm277_vm3, %v4381_v15  ;;  %v1210_v22 = vpop.f32.mrb[11].mxu1  ;;  %v1220_v23 = vmul.f32 0.35355338, %v3583_v21  ;;  %v3965_v15 = vunpack.i.h.bf16 %v3963_v32  ;;  %v3803_v19 = vpack.c.bf16 %v1465_v18, %v1464_v17  ;;  %v1557_v21 = vld [vmem:[%s4740_s8 + $0x8] sm:$0xff]  ;;  %v3293_v17 = vld [vmem:[%s4736_s4 + $0x38] sm:$0xff] }
 0x7ea   :  { %3786 = vmatprep.subr.bf16.mxu0 %v3785_v20  ;;  %v1219_v24 = vmul.f32 0.35355338, %v1210_v22  ;;  %v1558_v22 = vld [vmem:[%s4740_s8 + $0x10] sm:$0xff]  ;;  %v1561_v32 = vld [vmem:[%s4740_s8 + $0x28] sm:$0xff] }
 0x7eb   :  { %v1222_v35 = vadd.f32 %v1220_v23, %v4341_v37  ;;  %v3795_v42 = vpack.c.bf16 %v3965_v15, %v3964_v39 }
 0x7ec   :  { %v1221_v31 = vadd.f32 %v1219_v24, %v4343_v40  ;;  %v1559_v24 = vld [vmem:[%s4740_s8 + $0x18] sm:$0xff] }
 0x7ed   :  { %v1226_v41 = vsel %vm365_vm5, %v1222_v35, -inf  ;;  %v3811_v25 = vpack.c.bf16 %v1559_v24, %v1558_v22 }
 0x7ee   :  { %v1223_v33 = vsel %vm365_vm5, %v1221_v31, -inf }
 0x7ef   :  { %1224 = vmax.xlane.f32.xlu0 %v1223_v33 }
 0x7f0   :  { %3556 = vmatmul.mubr.msk.f32.vlgmr.msra.gmra.mrb[4].mxu0 %vm277_vm3, %v4379_v14 }
 0x7f1   :  { %3788 = vmatpush3.bf16.msra.mxu0 %v3785_v20  ;;  %3569 = vmatprep.mubr.msk.f32.mxu0 %vm365_vm5, %v956_v29  ;;  %v1556_v20 = vld [vmem:[%s4740_s8] sm:$0xff] }
 0x7f2   :  { %3572 = vmatprep.subr.mxu0 %v269_v38  ;;  %v3807_v23 = vpack.c.bf16 %v1557_v21, %v1556_v20 }
 0x7f3   :  { %1227 = vmax.xlane.f32.xlu0 %v1226_v41  ;;  %v3280_v41 = vld [vmem:[%s4742_s10] ss:$0 sm:$0xff] }
 0x7f4   :  { %3570 = vmatmul.mubr.msk.f32.vlgmr.msra.gmra.mrb[6].mxu0 %vm365_vm5, %v957_v28 }
 0x7f5   :  { %3573 = vmatpush3.msra.mxu0 %v269_v38 }
 0x7f6   :  { %3796 = vmatprep.subr.bf16.mxu0 %v3795_v42 }
 0x87c   :  { %v1225_v43 = vpop.xlane.xlu0 %1224 }
 0x87d   :  { %v1229_v44 = vsub.f32 %v1221_v31, %v1225_v43  ;;  %v1560_v31 = vld [vmem:[%s4740_s8 + $0x20] sm:$0xff] }
 0x87e   :  { %v3815_v33 = vpack.c.bf16 %v1561_v32, %v1560_v31  ;;  %v3281_v43 = vld [vmem:[%s4743_s11] ss:$0 sm:$0xff] }
 0x87f   :  { %v1231_v45 = vmul.f32 1.442695, %v1229_v44  ;;  %v3288_v31 = vld [vmem:[%s4744_s12] ss:$0 sm:$0xff] }
 0x880   :  { %v1228_v46 = vpop.xlane.xlu0 %1227 }
 0x881   :  { %4030 = vpow2.f32 %v1231_v45  ;;  %v1230_v47 = vsub.f32 %v1222_v35, %v1228_v46 }
 0x883   :  { %v1233_v14 = vmul.f32 1.442695, %v1230_v47 }
 0x885   :  { %4032 = vpow2.f32 %v1233_v14 }
 0x88b   :  { %v4031_v48 = vpop.eup %4030 }
 0x88c   :  { %v1235_v49 = vsel %vm365_vm5, %v4031_v48, 0.0 }
 0x88d   :  { %1236 = vadd.xlane.f32.xlu0 %v1235_v49  ;;  %v1562_v49 = vld [vmem:[%s4740_s8 + $0x30] sm:$0xff] }
 0x88f   :  { %v4033_v50 = vpop.eup %4032 }
 0x890   :  { %v1238_v51 = vsel %vm365_vm5, %v4033_v50, 0.0 }
 0x891   :  { %1239 = vadd.xlane.f32.xlu0 %v1238_v51 }
 0x8c7   :  { %v3571_v52 = vpop.f32.mrb[6].mxu0 }
 0x8c8   :  { %v1036_v53 = vpop.f32.mrb[7].mxu0 }
 0x8c9   :  { %3574 = vmatprep.mubr.msk.f32.mxu0 %vm277_vm3, %v1036_v53 }
 0x8ca   :  { %3575 = vmatmul.mubr.msk.f32.vlgmr.msra.gmra.mrb[4].mxu0 %vm277_vm3, %v3571_v52  ;;  %v3282_v52 = vld [vmem:[%s4739_s7] ss:$0 sm:$0xff] }
 0x8cb   :  { %3798 = vmatpush3.bf16.msra.mxu0 %v3795_v42 }
 0x8cc   :  { %3591 = vmatprep.subr.mxu0 %v270_v54 }
 0x91a   :  { %v1237_v55 = vpop.xlane.xlu0 %1236 }
 0x91b   :  { %4034 = vrcp.f32 %v1237_v55 }
 0x91e   :  { %v1240_v56 = vpop.xlane.xlu0 %1239 }
 0x91f   :  { %4036 = vrcp.f32 %v1240_v56 }
 0x925   :  { %v4035_v57 = vpop.eup %4034 }
 0x926   :  { %v1243_v58 = vmul.f32 %v4035_v57, %v4031_v48 }
 0x928   :  { %3588 = vmatprep.mubr.msk.f32.mxu0 %vm365_vm5, %v1243_v58 }
 0x929   :  { %v4037_v59 = vpop.eup %4036 }
 0x92a   :  { %v1244_v60 = vmul.f32 %v4037_v59, %v4033_v50  ;;  %v1563_v50 = vld [vmem:[%s4740_s8 + $0x38] sm:$0xff]  ;;  %v3285_v59 = vld [vmem:[%s4741_s9] ss:$0 sm:$0xff] }
 0x92b   :  { %v3819_v51 = vpack.c.bf16 %v1563_v50, %v1562_v49 }
 0x92c   :  { %3589 = vmatmul.mubr.msk.f32.vlgmr.msra.gmra.mrb[8].mxu0 %vm365_vm5, %v1244_v60 }
 0x92d   :  { %3592 = vmatpush3.msra.mxu0 %v270_v54 }
 0x92e   :  { %3808 = vmatprep.subr.bf16.mxu0 %v3807_v23 }
 0x9ff   :  { %v3590_v30 = vpop.f32.mrb[8].mxu0 }
 0xa00   :  { %v1323_v61 = vpop.f32.mrb[9].mxu0 }
 0xa01   :  { %3593 = vmatprep.mubr.msk.f32.mxu0 %vm277_vm3, %v1323_v61 }
 0xa02   :  { %3594 = vmatmul.mubr.msk.f32.vlgmr.msra.gmra.mrb[4].mxu0 %vm277_vm3, %v3590_v30 }
 0xa03   :  { %3810 = vmatpush3.bf16.msra.mxu0 %v3807_v23 }
 0xa04   :  { %3812 = vmatprep.subr.bf16.mxu0 %v3811_v25 }
 0xa07   :  { %3814 = vmatpush3.bf16.msra.mxu0 %v3811_v25 }
 0xa08   :  { %3816 = vmatprep.subr.bf16.mxu0 %v3815_v33 }
 0xa0b   :  { %3818 = vmatpush3.bf16.msra.mxu0 %v3815_v33  ;;  %v3289_v33 = vld [vmem:[%s4745_s13] ss:$0 sm:$0xff] }
 0xa0c   :  { %3820 = vmatprep.subr.bf16.mxu0 %v3819_v51 }
 0xa0f   :  { %3822 = vmatpush3.bf16.msra.mxu0 %v3819_v51 }
 0xad5   :  { %v3595_v62 = vpop.f32.mrb[4].mxu0 }
 0xad6   :  { %v1416_v63 = vadd.f32 %v3595_v62, %v4311_v27  ;;  %v1404_v0 = vpop.f32.mrb[5].mxu0 }
 0xad7   :  { %v1415_v1 = vadd.f32 %v1404_v0, %v4309_v26  ;;  %v1462_v26 = vld [vmem:[%s4738_s6] sm:$0xff] }
 0xad8   :  { %v1422_v2 = vsel %vm98_vm0, %v1416_v63, 0.0  ;;  %v3799_v16 = vpack.c.bf16 %v1463_v13, %v1462_v26  ;;  %v3291_v26 = vld [vmem:[%s4736_s4 + $0x28] sm:$0xff] }
 0xad9   :  { %1423 = vadd.xlane.f32.xlu1 %v1422_v2  ;;  %v1419_v3 = vsel %vm98_vm0, %v1415_v1, 0.0 }
 0xada   :  { %1420 = vadd.xlane.f32.xlu0 %v1419_v3  ;;  %3800 = vmatprep.subr.bf16.mxu1 %v3799_v16 }
 0xadb   :  { %3802 = vmatpush3.bf16.msra.mxu1 %v3799_v16  ;;  %v3292_v16 = vld [vmem:[%s4736_s4 + $0x30] sm:$0xff] }
 0xadc   :  { %3804 = vmatprep.subr.bf16.mxu1 %v3803_v19  ;;  %v3827_v18 = vpack.c.bf16 %v3293_v17, %v3292_v16 }
 0xadf   :  { %3806 = vmatpush3.bf16.msra.mxu1 %v3803_v19 }
 0xb66   :  { %v1424_v4 = vpop.xlane.xlu1 %1423 }
 0xb67   :  { %v1427_v5 = vmul.f32 0.03125, %v1424_v4  ;;  %v1421_v6 = vpop.xlane.xlu0 %1420 }
 0xb68   :  { %v1426_v7 = vmul.f32 0.03125, %v1421_v6 }
 0xb69   :  { %v1429_v8 = vsub.f32 %v1416_v63, %v1427_v5 }
 0xb6a   :  { %v1428_v9 = vsub.f32 %v1415_v1, %v1426_v7 }
 0xb6b   :  { %v1431_v12 = vmul.f32 %v1429_v8, %v1429_v8 }
 0xb6c   :  { %v1430_v10 = vmul.f32 %v1428_v9, %v1428_v9 }
 0xb6d   :  { %v1435_v27 = vsel %vm98_vm0, %v1431_v12, 0.0 }
 0xb6e   :  { %v1432_v11 = vsel %vm98_vm0, %v1430_v10, 0.0 }
 0xb6f   :  { %1433 = vadd.xlane.f32.xlu0 %v1432_v11 }
 0xb73   :  { %1436 = vadd.xlane.f32.xlu0 %v1435_v27  ;;  %v3290_v27 = vld [vmem:[%s4736_s4 + $0x20] sm:$0xff] }
 0xb74   :  { %v3823_v13 = vpack.c.bf16 %v3291_v26, %v3290_v27 }
 0xb76   :  { %3824 = vmatprep.subr.bf16.mxu1 %v3823_v13 }
 0xbfc   :  { %v1434_v35 = vpop.xlane.xlu0 %1433 }
 0xbfd   :  { %v1438_v36 = vmul.f32 0.03125, %v1434_v35 }
 0xbff   :  { %v1440_v29 = vadd.f32 1e-05, %v1438_v36 }
 0xc00   :  { %v1437_v38 = vpop.xlane.xlu0 %1436 }
 0xc01   :  { %4038 = vrsqrt.f32 %v1440_v29  ;;  %v1439_v15 = vmul.f32 0.03125, %v1437_v38 }
 0xc03   :  { %v1441_v39 = vadd.f32 1e-05, %v1439_v15 }
 0xc05   :  { %4040 = vrsqrt.f32 %v1441_v39 }
 0xc0b   :  { %v4039_v28 = vpop.eup %4038 }
 0xc0c   :  { %v1444_v42 = vmul.f32 %v4039_v28, %v1428_v9 }
 0xc0e   :  { %v1452_v44 = vmul.f32 %v3280_v41, %v1444_v42 }
 0xc0f   :  { %v4041_v45 = vpop.eup %4040 }
 0xc10   :  { %v1445_v46 = vmul.f32 %v4041_v45, %v1429_v8  ;;  %v1460_v47 = vadd.f32 %v3281_v43, %v1452_v44 }
 0xc12   :  { %v1453_v14 = vmul.f32 %v3280_v41, %v1445_v46  ;;  %3604 = vmatprep.mubr.msk.f32.mxu1 %vm98_vm0, %v1460_v47 }
 0xc14   :  { %v1461_v48 = vadd.f32 %v3281_v43, %v1453_v14 }
 0xc16   :  { %3605 = vmatmul.mubr.msk.f32.vlgmr.msra.gmra.mrb[12].mxu1 %vm98_vm0, %v1461_v48 }
 0xc17   :  { %3826 = vmatpush3.bf16.msra.mxu1 %v3823_v13 }
 0xc18   :  { %3828 = vmatprep.subr.bf16.mxu1 %v3827_v18 }
 0xc1b   :  { %3830 = vmatpush3.bf16.msra.mxu1 %v3827_v18 }
 0xce9   :  { %v3606_v53 = vpop.f32.mrb[12].mxu1 }
 0xcea   :  { %v1551_v54 = vadd.f32 %v3606_v53, %v3282_v52  ;;  %v1545_v55 = vpop.f32.mrb[13].mxu1 }
 0xceb   :  { %v1546_v56 = vadd.f32 %v3282_v52, %v1545_v55 }
 0xcec   :  { %v1555_v58 = vmax.f32 %v1551_v54, 0.0 }
 0xced   :  { %v1554_v57 = vmax.f32 %v1546_v56, 0.0 }
 0xcef   :  { %3623 = vmatprep.mubr.msk.f32.mxu0 %vm1571_vm6, %v1554_v57 }
 0xcf0   :  { %3624 = vmatmul.mubr.msk.f32.vlgmr.msra.gmra.mrb[10].mxu0 %vm1571_vm6, %v1555_v58 }
 0xdc3   :  { %v3625_v60 = vpop.f32.mrb[10].mxu0 }
 0xdc4   :  { %v1644_v30 = vpop.f32.mrb[11].mxu0  ;;  %v1650_v61 = vadd.f32 %v3625_v60, %v3285_v59 }
 0xdc5   :  { %v1645_v62 = vadd.f32 %v3285_v59, %v1644_v30 }
 0xdc6   :  { %v1654_v1 = vadd.f32 %v1650_v61, %v1461_v48 }
 0xdc7   :  { %v1653_v63 = vadd.f32 %v1645_v62, %v1460_v47 }
 0xdc8   :  { %v1660_v2 = vsel %vm98_vm0, %v1654_v1, 0.0 }
 0xdc9   :  { %v1657_v0 = vsel %vm98_vm0, %v1653_v63, 0.0 }
 0xdca   :  { %1658 = vadd.xlane.f32.xlu0 %v1657_v0 }
 0xdce   :  { %1661 = vadd.xlane.f32.xlu0 %v1660_v2 }
 0xe57   :  { %v1659_v3 = vpop.xlane.xlu0 %1658 }
 0xe58   :  { %v1663_v4 = vmul.f32 0.03125, %v1659_v3 }
 0xe5a   :  { %v1665_v5 = vsub.f32 %v1653_v63, %v1663_v4 }
 0xe5b   :  { %v1662_v6 = vpop.xlane.xlu0 %1661 }
 0xe5c   :  { %v1664_v7 = vmul.f32 0.03125, %v1662_v6  ;;  %v1667_v8 = vmul.f32 %v1665_v5, %v1665_v5 }
 0xe5e   :  { %v1666_v9 = vsub.f32 %v1654_v1, %v1664_v7  ;;  %v1669_v10 = vsel %vm98_vm0, %v1667_v8, 0.0 }
 0xe5f   :  { %1670 = vadd.xlane.f32.xlu0 %v1669_v10 }
 0xe60   :  { %v1668_v11 = vmul.f32 %v1666_v9, %v1666_v9 }
 0xe62   :  { %v1672_v12 = vsel %vm98_vm0, %v1668_v11, 0.0 }
 0xe63   :  { %1673 = vadd.xlane.f32.xlu0 %v1672_v12 }
 0xeec   :  { %v1671_v19 = vpop.xlane.xlu0 %1670 }
 0xeed   :  { %v1675_v20 = vmul.f32 0.03125, %v1671_v19 }
 0xeef   :  { %v1677_v21 = vadd.f32 1e-05, %v1675_v20 }
 0xef0   :  { %v1674_v22 = vpop.xlane.xlu0 %1673 }
 0xef1   :  { %4042 = vrsqrt.f32 %v1677_v21  ;;  %v1676_v23 = vmul.f32 0.03125, %v1674_v22 }
 0xef3   :  { %v1678_v24 = vadd.f32 1e-05, %v1676_v23 }
 0xef5   :  { %4044 = vrsqrt.f32 %v1678_v24 }
 0xefb   :  { %v4043_v25 = vpop.eup %4042 }
 0xefc   :  { %v1681_v32 = vmul.f32 %v4043_v25, %v1665_v5 }
 0xefe   :  { %v1689_v35 = vmul.f32 %v3288_v31, %v1681_v32 }
 0xeff   :  { %v4045_v36 = vpop.eup %4044 }
 0xf00   :  { %v1682_v29 = vmul.f32 %v4045_v36, %v1666_v9  ;;  %v4527_v38 = vadd.f32 %v3289_v33, %v1689_v35 }
 0xf02   :  { %v1690_v15 = vmul.f32 %v3288_v31, %v1682_v29  ;;  %3634 = vmatprep.mubr.msk.f32.mxu1 %vm98_vm0, %v4527_v38 }
 0xf04   :  { %v4531_v39 = vadd.f32 %v3289_v33, %v1690_v15 }
 0xf06   :  { %3635 = vmatmul.mubr.msk.f32.vlgmr.msra.gmra.mrb[14].mxu1 %vm98_vm0, %v4531_v39 }
 0xfd9   :  { %v4535_v28 = vpop.f32.mrb[14].mxu1 }
 0xfda   :  { %v4537_v41 = vpop.f32.mrb[15].mxu1 }
 0xfdb   :  { %3641 = vmatprep.mubr.msk.f32.mxu1 %vm277_vm3, %v4537_v41  ;;  %v4543_v42 = vpack.i.bf16 %v4535_v28, %v4537_v41 }
 0xfdd   :  { %3972 = vrot.lane.b32.xlu1 %v4543_v42, %s4167_s30  ;;  %3967 = vrot.lane.b32.xlu0 %v4543_v42, %s4166_s2 }
 0xfe1   :  { %3977 = vrot.lane.b32.xlu1 %v4543_v42, %s4170_s26  ;;  %1992 = vrot.lane.b32.xlu0 %v4537_v41, %s4168_s22 }
 0xfe5   :  { %2360 = vrot.lane.b32.xlu1 %v4535_v28, %s4171_s27  ;;  %1994 = vrot.lane.b32.xlu0 %v4535_v28, %s4168_s22 }
 0xfe9   :  { %2358 = vrot.lane.b32.xlu0 %v4537_v41, %s4171_s27  ;;  %s4752_s27 = smov 40  }
0x104f   :  { %v3973_v43 = vpop.permute.xlu1 %3972  ;;  %v3968_v44 = vpop.permute.xlu0 %3967 }
0x1050   :  { %v3975_v45 = vunpack.i.h.bf16 %v3973_v43  ;;  %v3974_v46 = vunpack.i.l.bf16 %v3973_v43  ;;  %v3970_v47 = vunpack.i.h.bf16 %v3968_v44  ;;  %v3969_v14 = vunpack.i.l.bf16 %v3968_v44 }
0x1052   :  { %v3831_v48 = vpack.c.bf16 %v3970_v47, %v3969_v14  ;;  %v3841_v49 = vpack.c.bf16 %v3975_v45, %v3974_v46 }
0x1053   :  { %v3978_v50 = vpop.permute.xlu1 %3977  ;;  %v1993_v53 = vpop.permute.xlu0 %1992 }
0x1054   :  { %3833 = vmatprep.subr.msk.bf16.mxu1 %vm4331_vm4, %v3831_v48  ;;  %v3980_v51 = vunpack.i.h.bf16 %v3978_v50  ;;  %v3979_v52 = vunpack.i.l.bf16 %v3978_v50 }
0x1055   :  { %3836 = vmatpush3.bf16.xpose.msk.msra.mxu1 %vm4331_vm4, %v3831_v48 }
0x1056   :  { %3843 = vmatprep.subr.msk.bf16.mxu1 %vm4331_vm4, %v3841_v49  ;;  %v3851_v54 = vpack.c.bf16 %v3980_v51, %v3979_v52 }
0x1057   :  { %v1995_v55 = vpop.permute.xlu0 %1994  ;;  %v2361_v57 = vpop.permute.xlu1 %2360 }
0x105b   :  { %v2359_v56 = vpop.permute.xlu0 %2358 }
0x105c   :  { %3642 = vmatmul.mubr.msk.f32.vlgmr.msra.gmra.mrb[16].mxu1 %vm277_vm3, %v4535_v28 }
0x105d   :  { %3846 = vmatpush3.bf16.xpose.msk.msra.mxu1 %vm4331_vm4, %v3841_v49  ;;  %3655 = vmatprep.mubr.msk.f32.mxu1 %vm277_vm3, %v1993_v53 }
0x105e   :  { %3853 = vmatprep.subr.msk.bf16.mxu1 %vm4331_vm4, %v3851_v54 }
0x1064   :  { %3656 = vmatmul.mubr.msk.f32.vlgmr.msra.gmra.mrb[18].mxu1 %vm277_vm3, %v1995_v55 }
0x1065   :  { %3856 = vmatpush3.bf16.xpose.msk.msra.mxu1 %vm4331_vm4, %v3851_v54  ;;  %3679 = vmatprep.mubr.msk.f32.mxu1 %vm277_vm3, %v2359_v56 }
0x106c   :  { %3680 = vmatmul.mubr.msk.f32.vlgmr.msra.gmra.mrb[20].mxu1 %vm277_vm3, %v2361_v57 }
0x112f   :  { %v3643_v58 = vpop.f32.mrb[16].mxu1 }
0x1130   :  { %v1880_v59 = vmul.f32 0.35355338, %v3643_v58  ;;  %v1870_v60 = vpop.f32.mrb[17].mxu1 }
0x1131   :  { %v1879_v30 = vmul.f32 0.35355338, %v1870_v60 }
0x1132   :  { %v1882_v61 = vadd.f32 %v1880_v59, %v4341_v37 }
0x1133   :  { %v1881_v62 = vadd.f32 %v1879_v30, %v4343_v40 }
0x1134   :  { %v1886_v63 = vsel %vm365_vm5, %v1882_v61, -inf }
0x1135   :  { %1887 = vmax.xlane.f32.xlu1 %v1886_v63  ;;  %v1883_v0 = vsel %vm365_vm5, %v1881_v62, -inf }
0x1136   :  { %1884 = vmax.xlane.f32.xlu0 %v1883_v0 }
0x1137   :  { %v3657_v1 = vpop.f32.mrb[18].mxu1 }
0x1138   :  { %v2074_v2 = vpop.f32.mrb[19].mxu1  ;;  %v2084_v3 = vmul.f32 0.35355338, %v3657_v1 }
0x1139   :  { %v2083_v4 = vmul.f32 0.35355338, %v2074_v2 }
0x113a   :  { %v2086_v7 = vadd.f32 %v2084_v3, %v4341_v37 }
0x113b   :  { %v2085_v5 = vadd.f32 %v2083_v4, %v4343_v40 }
0x113c   :  { %v2090_v10 = vsel %vm365_vm5, %v2086_v7, -inf }
0x113d   :  { %v2087_v6 = vsel %vm365_vm5, %v2085_v5, -inf }
0x113e   :  { %2088 = vmax.xlane.f32.xlu0 %v2087_v6 }
0x113f   :  { %v3681_v8 = vpop.f32.mrb[20].mxu1 }
0x1140   :  { %v2440_v9 = vpop.f32.mrb[21].mxu1  ;;  %v2450_v29 = vmul.f32 0.35355338, %v3681_v8 }
0x1141   :  { %v2449_v15 = vmul.f32 0.35355338, %v2440_v9 }
0x1142   :  { %2091 = vmax.xlane.f32.xlu0 %v2090_v10  ;;  %v2452_v44 = vadd.f32 %v2450_v29, %v4341_v37 }
0x1143   :  { %v2451_v43 = vadd.f32 %v2449_v15, %v4343_v40 }
0x1144   :  { %v2456_v46 = vsel %vm365_vm5, %v2452_v44, -inf }
0x1145   :  { %v2453_v45 = vsel %vm365_vm5, %v2451_v43, -inf }
0x11c2   :  { %v1888_v11 = vpop.xlane.xlu1 %1887 }
0x11c3   :  { %v1890_v12 = vsub.f32 %v1882_v61, %v1888_v11  ;;  %v1885_v27 = vpop.xlane.xlu0 %1884 }
0x11c4   :  { %v1889_v26 = vsub.f32 %v1881_v62, %v1885_v27  ;;  %v3296_v27 = vld [vmem:[%s4737_s5 + $0x20] sm:$0xff] }
0x11c5   :  { %v1893_v13 = vmul.f32 1.442695, %v1890_v12  ;;  %v3297_v12 = vld [vmem:[%s4737_s5 + $0x28] sm:$0xff] }
0x11c6   :  { %v1891_v16 = vmul.f32 1.442695, %v1889_v26 }
0x11c7   :  { %4046 = vpow2.f32 %v1893_v13 }
0x11c8   :  { %4048 = vpow2.f32 %v1891_v16 }
0x11cb   :  { %v2089_v17 = vpop.xlane.xlu0 %2088 }
0x11cc   :  { %v2093_v18 = vsub.f32 %v2085_v5, %v2089_v17 }
0x11ce   :  { %v2095_v19 = vmul.f32 1.442695, %v2093_v18 }
0x11cf   :  { %v2092_v20 = vpop.xlane.xlu0 %2091 }
0x11d0   :  { %4050 = vpow2.f32 %v2095_v19  ;;  %v2094_v21 = vsub.f32 %v2086_v7, %v2092_v20 }
0x11d1   :  { %v4047_v22 = vpop.eup %4046 }
0x11d2   :  { %v4049_v23 = vpop.eup %4048  ;;  %v2097_v24 = vmul.f32 1.442695, %v2094_v21  ;;  %v1898_v25 = vsel %vm365_vm5, %v4047_v22, 0.0 }
0x11d3   :  { %1899 = vadd.xlane.f32.xlu0 %v1898_v25  ;;  %v1895_v31 = vsel %vm365_vm5, %v4049_v23, 0.0 }
0x11d4   :  { %4052 = vpow2.f32 %v2097_v24  ;;  %1896 = vadd.xlane.f32.xlu1 %v1895_v31 }
0x11da   :  { %v4051_v32 = vpop.eup %4050 }
0x11db   :  { %v2099_v33 = vsel %vm365_vm5, %v4051_v32, 0.0 }
0x11dc   :  { %2100 = vadd.xlane.f32.xlu1 %v2099_v33 }
0x11de   :  { %v4053_v35 = vpop.eup %4052 }
0x11df   :  { %v2102_v36 = vsel %vm365_vm5, %v4053_v35, 0.0 }
0x11e0   :  { %2103 = vadd.xlane.f32.xlu0 %v2102_v36 }
0x11ed   :  { %3982 = vrot.lane.b32.xlu1 %v4543_v42, %s4169_s25 }
0x11f1   :  { %3992 = vrot.lane.b32.xlu1 %v4543_v42, %s4176_s0 }
0x11f5   :  { %2645 = vrot.lane.b32.xlu1 %v4537_v41, %s4173_s28 }
0x11f6   :  { %3987 = vrot.lane.b32.xlu0 %v4543_v42, %s4172_s3 }
0x11fa   :  { %2647 = vrot.lane.b32.xlu0 %v4535_v28, %s4173_s28 }
0x1219   :  { %2454 = vmax.xlane.f32.xlu1 %v2453_v45  ;;  %2457 = vmax.xlane.f32.xlu0 %v2456_v46 }
0x1260   :  { %v1900_v41 = vpop.xlane.xlu0 %1899 }
0x1261   :  { %v1897_v47 = vpop.xlane.xlu1 %1896 }
0x1262   :  { %4054 = vrcp.f32 %v1897_v47 }
0x1263   :  { %4056 = vrcp.f32 %v1900_v41  ;;  %v3298_v41 = vld [vmem:[%s4737_s5 + $0x30] sm:$0xff] }
0x1269   :  { %v2101_v14 = vpop.xlane.xlu1 %2100 }
0x126a   :  { %4058 = vrcp.f32 %v2101_v14 }
0x126c   :  { %v4055_v48 = vpop.eup %4054 }
0x126d   :  { %v3983_v28 = vpop.permute.xlu1 %3982  ;;  %v2104_v49 = vpop.xlane.xlu0 %2103  ;;  %v1903_v50 = vmul.f32 %v4055_v48, %v4049_v23 }
0x126e   :  { %v3985_v51 = vunpack.i.h.bf16 %v3983_v28  ;;  %v3984_v40 = vunpack.i.l.bf16 %v3983_v28  ;;  %4060 = vrcp.f32 %v2104_v49  ;;  %v4057_v52 = vpop.eup %4056 }
0x126f   :  { %3648 = vmatprep.mubr.msk.f32.mxu0 %vm365_vm5, %v1903_v50  ;;  %v1904_v60 = vmul.f32 %v4057_v52, %v4047_v22 }
0x1270   :  { %v3837_v37 = vpack.c.bf16 %v3985_v51, %v3984_v40 }
0x1271   :  { %v3993_v53 = vpop.permute.xlu1 %3992  ;;  %v3988_v54 = vpop.permute.xlu0 %3987 }
0x1272   :  { %v3995_v55 = vunpack.i.h.bf16 %v3993_v53  ;;  %v3994_v56 = vunpack.i.l.bf16 %v3993_v53  ;;  %v3990_v57 = vunpack.i.h.bf16 %v3988_v54  ;;  %v3989_v58 = vunpack.i.l.bf16 %v3988_v54  ;;  %3838 = vmatprep.subr.bf16.mxu0 %v3837_v37 }
0x1273   :  { %3840 = vmatpush3.bf16.msra.mxu0 %v3837_v37 }
0x1274   :  { %v4059_v59 = vpop.eup %4058  ;;  %v3861_v30 = vpack.c.bf16 %v3995_v55, %v3994_v56  ;;  %v3847_v61 = vpack.c.bf16 %v3990_v57, %v3989_v58 }
0x1275   :  { %v2646_v62 = vpop.permute.xlu1 %2645  ;;  %v2107_v63 = vmul.f32 %v4059_v59, %v4051_v32  ;;  %v2648_v2 = vpop.permute.xlu0 %2647 }
0x1276   :  { %3649 = vmatmul.mubr.msk.f32.vlgmr.msra.gmra.mrb[12].mxu0 %vm365_vm5, %v1904_v60  ;;  %3848 = vmatprep.subr.bf16.mxu0 %v3847_v61 }
0x1277   :  { %3863 = vmatprep.subr.msk.bf16.mxu1 %vm4331_vm4, %v3861_v30  ;;  %3698 = vmatprep.mubr.msk.f32.mxu1 %vm277_vm3, %v2646_v62 }
0x1278   :  { %v4061_v0 = vpop.eup %4060  ;;  %3850 = vmatpush3.bf16.msra.mxu0 %v3847_v61  ;;  %3662 = vmatprep.mubr.msk.f32.mxu0 %vm365_vm5, %v2107_v63  ;;  %v3299_v61 = vld [vmem:[%s4737_s5 + $0x38] sm:$0xff] }
0x1279   :  { %v2108_v1 = vmul.f32 %v4061_v0, %v4053_v35  ;;  %3866 = vmatpush3.bf16.xpose.msk.msra.mxu1 %vm4331_vm4, %v3861_v30  ;;  %3665 = vmatprep.subr.mxu0 %v3297_v12  ;;  %v4086_v35 = vld [vmem:[#allocation5] sm:$0xff] }
0x127b   :  { %3663 = vmatmul.mubr.msk.f32.vlgmr.msra.gmra.mrb[14].mxu0 %vm365_vm5, %v2108_v1 }
0x127c   :  { %3666 = vmatpush3.msra.mxu0 %v3297_v12 }
0x127d   :  { %3670 = vmatprep.subr.mxu0 %v3296_v27 }
0x1280   :  { %3699 = vmatmul.mubr.msk.f32.vlgmr.msra.gmra.mrb[22].mxu1 %vm277_vm3, %v2648_v2 }
0x12a6   :  { %v2455_v3 = vpop.xlane.xlu1 %2454  ;;  %v2458_v4 = vpop.xlane.xlu0 %2457 }
0x12a7   :  { %v2459_v5 = vsub.f32 %v2451_v43, %v2455_v3  ;;  %v2460_v6 = vsub.f32 %v2452_v44, %v2458_v4  ;;  %v4087_v44 = vld [vmem:[#allocation5 + $0x8] sm:$0xff] }
0x12a9   :  { %v2461_v7 = vmul.f32 1.442695, %v2459_v5  ;;  %v2463_v8 = vmul.f32 1.442695, %v2460_v6 }
0x12ab   :  { %4062 = vpow2.f32 %v2461_v7 }
0x12ac   :  { %4064 = vpow2.f32 %v2463_v8 }
0x12b5   :  { %v4063_v9 = vpop.eup %4062 }
0x12b6   :  { %v4065_v10 = vpop.eup %4064  ;;  %v2465_v11 = vsel %vm365_vm5, %v4063_v9, 0.0 }
0x12b7   :  { %2466 = vadd.xlane.f32.xlu0 %v2465_v11  ;;  %v2468_v34 = vsel %vm365_vm5, %v4065_v10, 0.0 }
0x12b8   :  { %2469 = vadd.xlane.f32.xlu1 %v2468_v34 }
0x12cd   :  { %3997 = vrot.lane.b32.xlu0 %v4543_v42, %s4174_s29 }
0x1344   :  { %v2467_v26 = vpop.xlane.xlu0 %2466 }
0x1345   :  { %v2470_v18 = vpop.xlane.xlu1 %2469  ;;  %4066 = vrcp.f32 %v2467_v26 }
0x1346   :  { %4068 = vrcp.f32 %v2470_v18 }
0x1348   :  { %v3998_v16 = vpop.permute.xlu0 %3997 }
0x1349   :  { %v3650_v13 = vpop.f32.mrb[12].mxu0  ;;  %v4000_v19 = vunpack.i.h.bf16 %v3998_v16  ;;  %v3999_v20 = vunpack.i.l.bf16 %v3998_v16 }
0x134a   :  { %v1983_v17 = vpop.f32.mrb[13].mxu0 }
0x134b   :  { %v3857_v23 = vpack.c.bf16 %v4000_v19, %v3999_v20  ;;  %v3338_v19 = vld [vmem:[%s4738_s6 + $0x30] sm:$0xff]  ;;  %v3339_v20 = vld [vmem:[%s4738_s6 + $0x38] sm:$0xff] }
0x134e   :  { %v3664_v21 = vpop.f32.mrb[14].mxu0 }
0x134f   :  { %v2187_v22 = vpop.f32.mrb[15].mxu0  ;;  %v4067_v33 = vpop.eup %4066 }
0x1350   :  { %3667 = vmatprep.mubr.msk.f32.mxu0 %vm277_vm3, %v2187_v22  ;;  %v4069_v29 = vpop.eup %4068  ;;  %v2473_v43 = vmul.f32 %v4067_v33, %v4063_v9  ;;  %v3344_v22 = vld [vmem:[%s4740_s8 + $0x40] sm:$0xff] }
0x1351   :  { %3668 = vmatmul.mubr.msk.f32.vlgmr.msra.gmra.mrb[16].mxu0 %vm277_vm3, %v3664_v21  ;;  %v2474_v46 = vmul.f32 %v4069_v29, %v4065_v10  ;;  %v3875_v21 = vpack.c.bf16 %v3339_v20, %v3338_v19  ;;  %v3348_v33 = vld [vmem:[%s4740_s8 + $0x60] sm:$0xff] }
0x1352   :  { %3671 = vmatpush3.msra.mxu0 %v3296_v27  ;;  %3672 = vmatprep.mubr.msk.f32.mxu0 %vm277_vm3, %v1983_v17  ;;  %v3337_v17 = vld [vmem:[%s4738_s6 + $0x28] sm:$0xff]  ;;  %v3358_v19 = vld [vmem:[%s4744_s12 + $0x1] ss:$0 sm:$0xff] }
0x1353   :  { %v3700_v24 = vpop.f32.mrb[22].mxu1  ;;  %3858 = vmatprep.subr.bf16.mxu0 %v3857_v23 }
0x1354   :  { %v2727_v25 = vpop.f32.mrb[23].mxu1  ;;  %v2737_v31 = vmul.f32 0.35355338, %v3700_v24  ;;  %v3346_v24 = vld [vmem:[%s4740_s8 + $0x50] sm:$0xff] }
0x1355   :  { %v2736_v32 = vmul.f32 0.35355338, %v2727_v25 }
0x1356   :  { %v2739_v45 = vadd.f32 %v4087_v44, %v2737_v31  ;;  %v3347_v31 = vld [vmem:[%s4740_s8 + $0x58] sm:$0xff] }
0x1357   :  { %v2738_v36 = vadd.f32 %v4086_v35, %v2736_v32  ;;  %v3883_v32 = vpack.c.bf16 %v3347_v31, %v3346_v24  ;;  %v3349_v35 = vld [vmem:[%s4740_s8 + $0x68] sm:$0xff] }
0x1358   :  { %v2743_v47 = vsel %vm365_vm5, %v2739_v45, -inf }
0x1359   :  { %v2740_v15 = vsel %vm365_vm5, %v2738_v36, -inf  ;;  %3673 = vmatmul.mubr.msk.f32.vlgmr.msra.gmra.mrb[16].mxu0 %vm277_vm3, %v3650_v13 }
0x135a   :  { %2741 = vmax.xlane.f32.xlu1 %v2740_v15  ;;  %3860 = vmatpush3.bf16.msra.mxu0 %v3857_v23  ;;  %v3345_v23 = vld [vmem:[%s4740_s8 + $0x48] sm:$0xff] }
0x135b   :  { %3686 = vmatprep.mubr.msk.f32.mxu0 %vm365_vm5, %v2473_v43  ;;  %3689 = vmatprep.subr.mxu0 %v3298_v41  ;;  %v3879_v25 = vpack.c.bf16 %v3345_v23, %v3344_v22 }
0x135d   :  { %3687 = vmatmul.mubr.msk.f32.vlgmr.msra.gmra.mrb[18].mxu0 %vm365_vm5, %v2474_v46 }
0x135e   :  { %2744 = vmax.xlane.f32.xlu1 %v2743_v47  ;;  %3690 = vmatpush3.msra.mxu0 %v3298_v41  ;;  %v3334_v41 = vld [vmem:[%s4742_s10 + $0x1] ss:$0 sm:$0xff] }
0x13e7   :  { %v2742_v14 = vpop.xlane.xlu1 %2741 }
0x13e8   :  { %v2746_v48 = vsub.f32 %v2738_v36, %v2742_v14  ;;  %v3887_v36 = vpack.c.bf16 %v3349_v35, %v3348_v33 }
0x13ea   :  { %v2748_v50 = vmul.f32 1.442695, %v2746_v48  ;;  %v3335_v48 = vld [vmem:[%s4743_s11 + $0x1] ss:$0 sm:$0xff] }
0x13eb   :  { %v2745_v28 = vpop.xlane.xlu1 %2744 }
0x13ec   :  { %v2747_v49 = vsub.f32 %v2739_v45, %v2745_v28 }
0x13ee   :  { %v2750_v51 = vmul.f32 1.442695, %v2747_v49 }
0x13f0   :  { %4070 = vpow2.f32 %v2750_v51 }
0x13f1   :  { %4072 = vpow2.f32 %v2748_v50 }
0x13fa   :  { %v4071_v40 = vpop.eup %4070 }
0x13fb   :  { %v2755_v37 = vsel %vm365_vm5, %v4071_v40, 0.0  ;;  %v4073_v52 = vpop.eup %4072 }
0x13fc   :  { %2756 = vadd.xlane.f32.xlu1 %v2755_v37  ;;  %v2752_v53 = vsel %vm365_vm5, %v4073_v52, 0.0 }
0x1400   :  { %2753 = vadd.xlane.f32.xlu1 %v2752_v53  ;;  %v3351_v53 = vld [vmem:[%s4740_s8 + $0x78] sm:$0xff] }
0x1411   :  { %4002 = vrot.lane.b32.xlu1 %v4543_v42, %s4752_s27 }
0x1430   :  { %v3688_v54 = vpop.f32.mrb[18].mxu0 }
0x1431   :  { %v2553_v55 = vpop.f32.mrb[19].mxu0 }
0x1432   :  { %3691 = vmatprep.mubr.msk.f32.mxu0 %vm277_vm3, %v2553_v55  ;;  %v3341_v55 = vld [vmem:[%s4739_s7 + $0x1] ss:$0 sm:$0xff] }
0x1433   :  { %3692 = vmatmul.mubr.msk.f32.vlgmr.msra.gmra.mrb[16].mxu0 %vm277_vm3, %v3688_v54 }
0x1489   :  { %v2757_v56 = vpop.xlane.xlu1 %2756 }
0x148a   :  { %4074 = vrcp.f32 %v2757_v56 }
0x148d   :  { %v2754_v57 = vpop.xlane.xlu1 %2753 }
0x148e   :  { %4076 = vrcp.f32 %v2754_v57 }
0x1491   :  { %v4003_v58 = vpop.permute.xlu1 %4002 }
0x1492   :  { %v4005_v59 = vunpack.i.h.bf16 %v4003_v58  ;;  %v4004_v60 = vunpack.i.l.bf16 %v4003_v58 }
0x1494   :  { %v3867_v30 = vpack.c.bf16 %v4005_v59, %v4004_v60  ;;  %v4075_v42 = vpop.eup %4074 }
0x1495   :  { %v2761_v0 = vmul.f32 %v4075_v42, %v4071_v40 }
0x1496   :  { %3868 = vmatprep.subr.bf16.mxu0 %v3867_v30 }
0x1497   :  { %3870 = vmatpush3.bf16.msra.mxu0 %v3867_v30 }
0x1498   :  { %v4077_v62 = vpop.eup %4076  ;;  %3708 = vmatprep.subr.mxu0 %v3299_v61 }
0x1499   :  { %v2760_v63 = vmul.f32 %v4077_v62, %v4073_v52  ;;  %v3350_v52 = vld [vmem:[%s4740_s8 + $0x70] sm:$0xff] }
0x149a   :  { %v3891_v54 = vpack.c.bf16 %v3351_v53, %v3350_v52 }
0x149b   :  { %3705 = vmatprep.mubr.msk.f32.mxu0 %vm365_vm5, %v2760_v63 }
0x149c   :  { %3706 = vmatmul.mubr.msk.f32.vlgmr.msra.gmra.mrb[20].mxu0 %vm365_vm5, %v2761_v0 }
0x149d   :  { %3709 = vmatpush3.msra.mxu0 %v3299_v61  ;;  %v3353_v61 = vld [vmem:[%s4741_s9 + $0x1] ss:$0 sm:$0xff] }
0x149e   :  { %3880 = vmatprep.subr.bf16.mxu0 %v3879_v25 }
0x156f   :  { %v3707_v1 = vpop.f32.mrb[20].mxu0 }
0x1570   :  { %v2840_v2 = vpop.f32.mrb[21].mxu0 }
0x1571   :  { %3710 = vmatprep.mubr.msk.f32.mxu0 %vm277_vm3, %v2840_v2 }
0x1572   :  { %3711 = vmatmul.mubr.msk.f32.vlgmr.msra.gmra.mrb[16].mxu0 %vm277_vm3, %v3707_v1 }
0x1573   :  { %3882 = vmatpush3.bf16.msra.mxu0 %v3879_v25 }
0x1574   :  { %3884 = vmatprep.subr.bf16.mxu0 %v3883_v32 }
0x1577   :  { %3886 = vmatpush3.bf16.msra.mxu0 %v3883_v32 }
0x1578   :  { %3888 = vmatprep.subr.bf16.mxu0 %v3887_v36 }
0x157b   :  { %3890 = vmatpush3.bf16.msra.mxu0 %v3887_v36 }
0x157c   :  { %3892 = vmatprep.subr.bf16.mxu0 %v3891_v54 }
0x157f   :  { %3894 = vmatpush3.bf16.msra.mxu0 %v3891_v54 }
0x1645   :  { %v3712_v3 = vpop.f32.mrb[16].mxu0 }
0x1646   :  { %v2933_v4 = vadd.f32 %v3712_v3, %v4531_v39  ;;  %v2921_v5 = vpop.f32.mrb[17].mxu0 }
0x1647   :  { %v2932_v6 = vadd.f32 %v2921_v5, %v4527_v38  ;;  %v3336_v38 = vld [vmem:[%s4738_s6 + $0x20] sm:$0xff] }
0x1648   :  { %v2941_v7 = vsel %vm98_vm0, %v2933_v4, 0.0  ;;  %v3871_v18 = vpack.c.bf16 %v3337_v17, %v3336_v38 }
0x1649   :  { %2942 = vadd.xlane.f32.xlu1 %v2941_v7  ;;  %v2938_v8 = vsel %vm98_vm0, %v2932_v6, 0.0 }
0x164a   :  { %2939 = vadd.xlane.f32.xlu0 %v2938_v8  ;;  %3872 = vmatprep.subr.bf16.mxu1 %v3871_v18 }
0x164b   :  { %3874 = vmatpush3.bf16.msra.mxu1 %v3871_v18 }
0x164c   :  { %3876 = vmatprep.subr.bf16.mxu1 %v3875_v21 }
0x164f   :  { %3878 = vmatpush3.bf16.msra.mxu1 %v3875_v21  ;;  %v3359_v21 = vld [vmem:[%s4745_s13 + $0x1] ss:$0 sm:$0xff] }
0x16d6   :  { %v2943_v9 = vpop.xlane.xlu1 %2942 }
0x16d7   :  { %v2945_v10 = vmul.f32 0.03125, %v2943_v9  ;;  %v2940_v11 = vpop.xlane.xlu0 %2939 }
0x16d8   :  { %v2944_v34 = vmul.f32 0.03125, %v2940_v11 }
0x16d9   :  { %v2947_v12 = vsub.f32 %v2933_v4, %v2945_v10 }
0x16da   :  { %v2946_v27 = vsub.f32 %v2932_v6, %v2944_v34 }
0x16db   :  { %v2949_v16 = vmul.f32 %v2947_v12, %v2947_v12 }
0x16dc   :  { %v2948_v26 = vmul.f32 %v2946_v27, %v2946_v27 }
0x16dd   :  { %v2953_v39 = vsel %vm98_vm0, %v2949_v16, 0.0 }
0x16de   :  { %v2950_v13 = vsel %vm98_vm0, %v2948_v26, 0.0 }
0x16df   :  { %2951 = vadd.xlane.f32.xlu0 %v2950_v13 }
0x16e3   :  { %2954 = vadd.xlane.f32.xlu0 %v2953_v39 }
0x176c   :  { %v2952_v29 = vpop.xlane.xlu0 %2951 }
0x176d   :  { %v2956_v15 = vmul.f32 0.03125, %v2952_v29 }
0x176f   :  { %v2958_v43 = vadd.f32 1e-05, %v2956_v15 }
0x1770   :  { %v2955_v44 = vpop.xlane.xlu0 %2954 }
0x1771   :  { %4078 = vrsqrt.f32 %v2958_v43  ;;  %v2957_v45 = vmul.f32 0.03125, %v2955_v44 }
0x1773   :  { %v2959_v46 = vadd.f32 1e-05, %v2957_v45 }
0x1775   :  { %4080 = vrsqrt.f32 %v2959_v46 }
0x177b   :  { %v4079_v47 = vpop.eup %4078 }
0x177c   :  { %v2962_v14 = vmul.f32 %v4079_v47, %v2946_v27 }
0x177e   :  { %v2970_v28 = vmul.f32 %v3334_v41, %v2962_v14 }
0x177f   :  { %v4081_v49 = vpop.eup %4080 }
0x1780   :  { %v2963_v50 = vmul.f32 %v4081_v49, %v2947_v12  ;;  %v2978_v51 = vadd.f32 %v3335_v48, %v2970_v28 }
0x1782   :  { %v2971_v40 = vmul.f32 %v3334_v41, %v2963_v50  ;;  %3721 = vmatprep.mubr.msk.f32.mxu1 %vm98_vm0, %v2978_v51 }
0x1784   :  { %v2979_v37 = vadd.f32 %v3335_v48, %v2971_v40 }
0x1786   :  { %3722 = vmatmul.mubr.msk.f32.vlgmr.msra.gmra.mrb[24].mxu1 %vm98_vm0, %v2979_v37 }
0x1859   :  { %v3723_v56 = vpop.f32.mrb[24].mxu1 }
0x185a   :  { %v3071_v57 = vadd.f32 %v3723_v56, %v3341_v55  ;;  %v3065_v58 = vpop.f32.mrb[25].mxu1 }
0x185b   :  { %v3066_v59 = vadd.f32 %v3341_v55, %v3065_v58 }
0x185c   :  { %v3075_v30 = vmax.f32 %v3071_v57, 0.0 }
0x185d   :  { %v3074_v60 = vmax.f32 %v3066_v59, 0.0 }
0x185f   :  { %3740 = vmatprep.mubr.msk.f32.mxu0 %vm1571_vm6, %v3074_v60 }
0x1860   :  { %3741 = vmatmul.mubr.msk.f32.vlgmr.msra.gmra.mrb[22].mxu0 %vm1571_vm6, %v3075_v30 }
0x1933   :  { %v3742_v42 = vpop.f32.mrb[22].mxu0 }
0x1934   :  { %v3165_v62 = vpop.f32.mrb[23].mxu0  ;;  %v3171_v63 = vadd.f32 %v3742_v42, %v3353_v61 }
0x1935   :  { %v3166_v0 = vadd.f32 %v3353_v61, %v3165_v62 }
0x1936   :  { %v3175_v3 = vadd.f32 %v3171_v63, %v2979_v37 }
0x1937   :  { %v3174_v1 = vadd.f32 %v3166_v0, %v2978_v51 }
0x1938   :  { %v3183_v4 = vsel %vm98_vm0, %v3175_v3, 0.0 }
0x1939   :  { %v3180_v2 = vsel %vm98_vm0, %v3174_v1, 0.0 }
0x193a   :  { %3181 = vadd.xlane.f32.xlu0 %v3180_v2 }
0x193e   :  { %3184 = vadd.xlane.f32.xlu0 %v3183_v4 }
0x19c7   :  { %v3182_v5 = vpop.xlane.xlu0 %3181 }
0x19c8   :  { %v3186_v6 = vmul.f32 0.03125, %v3182_v5 }
0x19ca   :  { %v3188_v7 = vsub.f32 %v3174_v1, %v3186_v6 }
0x19cb   :  { %v3185_v8 = vpop.xlane.xlu0 %3184 }
0x19cc   :  { %v3187_v9 = vmul.f32 0.03125, %v3185_v8  ;;  %v3190_v10 = vmul.f32 %v3188_v7, %v3188_v7 }
0x19ce   :  { %v3189_v11 = vsub.f32 %v3175_v3, %v3187_v9  ;;  %v3192_v34 = vsel %vm98_vm0, %v3190_v10, 0.0 }
0x19cf   :  { %3193 = vadd.xlane.f32.xlu0 %v3192_v34 }
0x19d0   :  { %v3191_v12 = vmul.f32 %v3189_v11, %v3189_v11 }
0x19d2   :  { %v3195_v27 = vsel %vm98_vm0, %v3191_v12, 0.0 }
0x19d3   :  { %3196 = vadd.xlane.f32.xlu1 %v3195_v27 }
0x1a5c   :  { %v3194_v26 = vpop.xlane.xlu0 %3193 }
0x1a5d   :  { %v3198_v13 = vmul.f32 0.03125, %v3194_v26 }
0x1a5f   :  { %v3200_v16 = vadd.f32 1e-05, %v3198_v13 }
0x1a60   :  { %v3197_v39 = vpop.xlane.xlu1 %3196 }
0x1a61   :  { %4082 = vrsqrt.f32 %v3200_v16  ;;  %v3199_v38 = vmul.f32 0.03125, %v3197_v39 }
0x1a63   :  { %v3201_v17 = vadd.f32 1e-05, %v3199_v38 }
0x1a65   :  { %4084 = vrsqrt.f32 %v3201_v17 }
0x1a6b   :  { %v4083_v18 = vpop.eup %4082 }
0x1a6c   :  { %v3204_v20 = vmul.f32 %v4083_v18, %v3188_v7 }
0x1a6e   :  { %v3212_v22 = vmul.f32 %v3358_v19, %v3204_v20 }
0x1a6f   :  { %v4085_v23 = vpop.eup %4084 }
0x1a70   :  { %v3205_v24 = vmul.f32 %v4085_v23, %v3189_v11  ;;  %v3220_v25 = vadd.f32 %v3359_v21, %v3212_v22 }
0x1a72   :  { %v3213_v31 = vmul.f32 %v3358_v19, %v3205_v24  ;;  %3222 = vst.msk [vmem:[#allocation7] sm:$0xff] %vm98_vm0, %v3220_v25 }
0x1a74   :  { %v3221_v32 = vadd.f32 %v3359_v21, %v3213_v31 }
0x1a76   :  { %3223 = vst.msk [vmem:[#allocation7 + $0x8] sm:$0xff] %vm98_vm0, %v3221_v32 }
0x1a77   :  { %4143 = shalt.err (!%p4140_p6)
}
0x1a78   :  { %s4144_s19 = scalar_lea.hbm %s4746_s14, 256 }
0x1a79   :  { %p4145_p7 = scmp.ne.s32.totalorder %s4746_s14, %s4144_s19  ;;  %p4148_p8 = scmp.lt.u32.totalorder %s4144_s19, %s4746_s14 }
0x1a7b   :  { %p4150_p9 = pnand %p4148_p8, %p4145_p7 }
0x1a7d   :  { %4153 = shalt.err (!%p4150_p9)
}
0x1a7e   :  { %s4753_s6 = smov 8   ;;  %s4754_s22 = smov 128  }
0x1a7f   :  { %3235 = dma.vmem_to_hbm [thread:$0]  %s3230_s24, 256, %s4746_s14, [#allocation4], %s4754_s22, %s4754_s22, %s4753_s6  }
0x1a80   :  { %4158 = dma.done.wait [#allocation4], 256  }
0x1a81   :  { %4159 = vsyncadd [#allocation4], 4294967040 }
0x1a82   :  { %3239 = vsyncpa [#allocation3], 1 }
0x1a83   :  { %3240 = vsyncpa [#allocation6], 1 }
0x1a84   :  { %3241 = vsyncpa [#allocation4], 1 }

</bundles_post_ra>
